<compile_context>
chip_gen: v5e
topology: v5e:2x2
jax: 0.10.0
libtpu: 0.0.40
codegen_flags: <defaults>
</compile_context>

<pallas_src>
import jax
import jax.numpy as jnp
from jax import lax
from jax.experimental import pallas as pl
from jax.experimental.pallas import tpu as pltpu


_LANE = 128
_EPS = 1e-9          # guards IoU denominator (also makes zero-padded cells finite)


def _make_yolo_loss_kernel(S, B, C):
    inv_S = 1.0 / float(S)

    def kernel(pred_ref, tb_ref, tc_ref, obj_ref, out_ref, acc_ref):
        k = pl.program_id(1)

        @pl.when(k == 0)
        def _init():
            acc_ref[...] = jnp.zeros_like(acc_ref)

        obj = obj_ref[...].astype(jnp.float32)          # (R, 128)
        noobj = 1.0 - obj

        # ---- target boxes xywh -> xyxy (same transform as xywh2xyxy) ----
        tx = tb_ref[0].astype(jnp.float32)
        ty = tb_ref[1].astype(jnp.float32)
        tw = tb_ref[2].astype(jnp.float32)
        th = tb_ref[3].astype(jnp.float32)
        txs = tx * inv_S
        tys = ty * inv_S
        tx1 = txs - 0.5 * tw
        ty1 = tys - 0.5 * th
        tx2 = txs + 0.5 * tw
        ty2 = tys + 0.5 * th
        t_area = (tx2 - tx1) * (ty2 - ty1)

        noobj_sq = jnp.zeros_like(obj)
        best_iou = best_conf = None
        best_x1 = best_y1 = best_x2 = best_y2 = None

        # B is a tiny static constant -> unrolled; per-feature ref slices keep
        # only a handful of (R,128) temporaries live (no spills).
        for b in range(B):
            o = 5 * b
            x = pred_ref[o + 0].astype(jnp.float32)
            y = pred_ref[o + 1].astype(jnp.float32)
            w = pred_ref[o + 2].astype(jnp.float32)
            h = pred_ref[o + 3].astype(jnp.float32)
            c = pred_ref[o + 4].astype(jnp.float32)

            # no-object conf^2; mask + divide-by-count hoisted out of the loop
            noobj_sq = noobj_sq + c * c

            xs = x * inv_S
            ys = y * inv_S
            x1 = xs - 0.5 * w
            y1 = ys - 0.5 * h
            x2 = xs + 0.5 * w
            y2 = ys + 0.5 * h

            iw = jnp.maximum(jnp.minimum(x2, tx2) - jnp.maximum(x1, tx1), 0.0)
            ih = jnp.maximum(jnp.minimum(y2, ty2) - jnp.maximum(y1, ty1), 0.0)
            inter = iw * ih
            p_area = (x2 - x1) * (y2 - y1)
            # exact divide kept (approx recip could flip best-box ties)
            iou = inter / (p_area + t_area - inter + _EPS)

            if b == 0:
                best_iou, best_conf = iou, c
                best_x1, best_y1, best_x2, best_y2 = x1, y1, x2, y2
            else:
                take = iou > best_iou                    # ties keep earlier box
                best_x1 = jnp.where(take, x1, best_x1)
                best_y1 = jnp.where(take, y1, best_y1)
                best_x2 = jnp.where(take, x2, best_x2)
                best_y2 = jnp.where(take, y2, best_y2)
                best_conf = jnp.where(take, c, best_conf)
                best_iou = jnp.where(take, iou, best_iou)

        dx1 = best_x1 - tx1
        dy1 = best_y1 - ty1
        dx2 = best_x2 - tx2
        dy2 = best_y2 - ty2
        reg = obj * (dx1 * dx1 + dy1 * dy1 + dx2 * dx2 + dy2 * dy2)
        dc = best_conf - best_iou
        contain = obj * (dc * dc)

        # ---- class cross-entropy; target is one-hot so logit_t = sum(tc*pc) ----
        # two streaming passes over the class rows: VMEM re-loads are cheap
        # (3 vld slots/cycle) and keep vreg pressure low; the exp's land on the
        # EUP slot (separate from VPU), so this section hides under the box math.
        m = pred_ref[5 * B].astype(jnp.float32)
        for ci in range(1, C):
            m = jnp.maximum(m, pred_ref[5 * B + ci].astype(jnp.float32))
        sexp = jnp.zeros_like(m)
        logit_t = jnp.zeros_like(m)
        for ci in range(C):
            pc = pred_ref[5 * B + ci].astype(jnp.float32)
            sexp = sexp + jnp.exp(pc - m)
            logit_t = logit_t + tc_ref[ci].astype(jnp.float32) * pc
        ce = obj * (m + jnp.log(sexp) - logit_t)

        # per-lane partial sums -> rows 0..4 of the (8,128) accumulator
        upd = jnp.concatenate(
            [jnp.sum(reg, axis=0, keepdims=True),
             jnp.sum(contain, axis=0, keepdims=True),
             jnp.sum(noobj * noobj_sq, axis=0, keepdims=True),
             jnp.sum(ce, axis=0, keepdims=True),
             jnp.sum(obj, axis=0, keepdims=True),
             jnp.zeros((3, _LANE), jnp.float32)],
            axis=0)                                      # (8, 128)
        acc_ref[...] = acc_ref[...] + upd

        @pl.when(k == pl.num_programs(1) - 1)
        def _finalize():
            out_ref[...] = acc_ref[...]

    return kernel


def _feature_major(x2d, Mp):
    """(M, F) -> (F, Mp//128, 128), zero-padded along the cell axis."""
    M, F = x2d.shape
    xt = jnp.transpose(x2d)                              # (F, M)
    if Mp != M:
        xt = jnp.pad(xt, ((0, 0), (0, Mp - M)))
    return xt.reshape(F, Mp // _LANE, _LANE)


def yolo_loss(pred_tensor, target_boxes, target_cls, has_object_map,
              *, S, B, l_coord, l_noobj):
    N = pred_tensor.shape[0]
    F_pred = pred_tensor.shape[-1]
    C = target_cls.shape[-1]
    assert F_pred == 5 * B + C
    M = N * S * S

    # ---- tiling: R rows of 128 cells per grid step, P core shards (v7x) ----
    r_total = -(-M // _LANE)                  # cdiv(M, 128)
    R_BLOCK = 8                               # 1024 cells / step (~225 KB/buffer set)
    if r_total <= R_BLOCK:
        R, P, K = r_total, 1, 1
    else:
        R = R_BLOCK
        P = 2 if r_total >= 4 * R_BLOCK else 1
        K = -(-r_total // (R * P))
    r_padded = R * P * K
    Mp = r_padded * _LANE
    # VMEM footprint: (5B+C+4+C+1) rows * R*128 * 4 B * 2 buffers ≈ 0.5 MiB at R=8
    # -> far below every chip's scoped limit (incl. v7x's 64 MiB physical VMEM).

    # Keep native dtypes (cast happens in-kernel after load); only the bool mask
    # is widened.  The transpose/pad below is pure layout plumbing (one HBM pass
    # done by XLA) that buys lane-dense (128-wide) VPU work inside the kernel.
    pred_fm = _feature_major(pred_tensor.reshape(M, F_pred), Mp)
    tb_fm = _feature_major(target_boxes.reshape(M, 4), Mp)
    tc_fm = _feature_major(target_cls.reshape(M, C), Mp)
    obj_fm = _feature_major(
        has_object_map.reshape(M, 1).astype(jnp.float32), Mp)[0]   # (r_padded, 128)

    kernel = _make_yolo_loss_kernel(S, B, C)

    out = pl.pallas_call(
        kernel,
        out_shape=jax.ShapeDtypeStruct((P * 8, _LANE), jnp.float32),
        grid=(P, K),
        in_specs=[
            pl.BlockSpec((F_pred, R, _LANE), lambda p, k: (0, p * K + k, 0)),
            pl.BlockSpec((4, R, _LANE), lambda p, k: (0, p * K + k, 0)),
            pl.BlockSpec((C, R, _LANE), lambda p, k: (0, p * K + k, 0)),
            pl.BlockSpec((R, _LANE), lambda p, k: (p * K + k, 0)),
        ],
        out_specs=pl.BlockSpec((8, _LANE), lambda p, k: (p, 0)),
        scratch_shapes=[pltpu.VMEM((8, _LANE), jnp.float32)],
        compiler_params=pltpu.CompilerParams(
            dimension_semantics=("parallel", "arbitrary")),
    )(pred_fm, tb_fm, tc_fm, obj_fm)

    # ---- tiny scalar epilogue: combine per-core partial sums & normalize ----
    raw = jnp.sum(out.reshape(P, 8, _LANE), axis=(0, 2))            # (8,)
    reg_raw, contain_raw, noobj_sq_raw, ce_raw, obj_sum = (
        raw[0], raw[1], raw[2], raw[3], raw[4])

    obj_cnt = jnp.maximum(obj_sum, 1.0)
    noobj_cnt = jnp.maximum(jnp.float32(M) - obj_sum, 1.0)

    reg_loss = l_coord * reg_raw
    contain_loss = contain_raw
    no_obj_loss = l_noobj * noobj_sq_raw / noobj_cnt
    cls_loss = ce_raw / obj_cnt
    total = reg_loss + contain_loss + no_obj_loss + cls_loss

    inv_n = 1.0 / N
    return {
        "total_loss": inv_n * total,
        "reg_loss": inv_n * reg_loss,
        "containing_obj_loss": inv_n * contain_loss,
        "no_obj_loss": inv_n * no_obj_loss,
        "cls_loss": inv_n * cls_loss,
    }


def _reference_loss(pred_tensor, target_boxes, target_cls, has_object_map,
                    *, S, B, l_coord, l_noobj):
    """Pure-JAX reference with identical math (for a sanity check)."""
    N = pred_tensor.shape[0]
    C = target_cls.shape[-1]
    M = N * S * S
    pb = pred_tensor[..., : B * 5].reshape(M, B * 5).astype(jnp.float32)
    pc = pred_tensor[..., B * 5:].reshape(M, C).astype(jnp.float32)
    tb = target_boxes.reshape(M, 4).astype(jnp.float32)
    tc = target_cls.reshape(M, C).astype(jnp.float32)
    obj = has_object_map.reshape(M, 1).astype(jnp.float32)
    noobj = 1.0 - obj

    def xyxy(b4):
        x, y, w, h = b4[:, 0:1], b4[:, 1:2], b4[:, 2:3], b4[:, 3:4]
        return jnp.concatenate([x / S - 0.5 * w, y / S - 0.5 * h,
                                x / S + 0.5 * w, y / S + 0.5 * h], axis=1)

    tgt = xyxy(tb)
    t_area = (tgt[:, 2:3] - tgt[:, 0:1]) * (tgt[:, 3:4] - tgt[:, 1:2])
    noobj_cnt = jnp.maximum(jnp.sum(noobj), 1.0)
    obj_cnt = jnp.maximum(jnp.sum(obj), 1.0)

    no_obj = 0.0
    best_iou = None
    best_box = None
    best_conf = None
    for b in range(B):
        box = pb[:, 5 * b:5 * b + 4]
        conf = pb[:, 5 * b + 4:5 * b + 5]
        no_obj = no_obj + jnp.sum(noobj * conf * conf) / noobj_cnt
        p = xyxy(box)
        iw = jnp.maximum(jnp.minimum(p[:, 2:3], tgt[:, 2:3]) -
                         jnp.maximum(p[:, 0:1], tgt[:, 0:1]), 0.0)
        ih = jnp.maximum(jnp.minimum(p[:, 3:4], tgt[:, 3:4]) -
                         jnp.maximum(p[:, 1:2], tgt[:, 1:2]), 0.0)
        inter = iw * ih
        p_area = (p[:, 2:3] - p[:, 0:1]) * (p[:, 3:4] - p[:, 1:2])
        iou = inter / (p_area + t_area - inter)
        if b == 0:
            best_iou, best_box, best_conf = iou, p, conf
        else:
            take = iou > best_iou
            best_box = jnp.where(take, p, best_box)
            best_conf = jnp.where(take, conf, best_conf)
            best_iou = jnp.where(take, iou, best_iou)

    reg = l_coord * jnp.sum(obj * jnp.sum((best_box - tgt) ** 2, axis=1,
                                          keepdims=True))
    contain = jnp.sum(obj * (best_conf - best_iou) ** 2)
    logp = jax.nn.log_softmax(pc, axis=-1)
    ce = -jnp.take_along_axis(logp, jnp.argmax(tc, axis=-1, keepdims=True),
                              axis=-1)
    cls = jnp.sum(obj * ce) / obj_cnt
    no_obj = l_noobj * no_obj
    inv_n = 1.0 / N
    return {
        "total_loss": inv_n * (reg + contain + no_obj + cls),
        "reg_loss": inv_n * reg,
        "containing_obj_loss": inv_n * contain,
        "no_obj_loss": inv_n * no_obj,
        "cls_loss": inv_n * cls,
    }


def _make_inputs(key, N, S, B, C):
    k1, k2, k3, k4 = jax.random.split(key, 4)
    pred_tensor = jax.random.uniform(k1, (N, S, S, B * 5 + C), dtype=jnp.float32)
    txy = jax.random.uniform(k2, (N, S, S, 2), minval=0.0, maxval=float(S))
    twh = jax.random.uniform(k3, (N, S, S, 2), minval=0.1, maxval=0.9)
    target_boxes = jnp.concatenate([txy, twh], axis=-1).astype(jnp.float32)
    cls_idx = jax.random.randint(k4, (N, S, S), 0, C)
    target_cls = jax.nn.one_hot(cls_idx, C, dtype=jnp.float32)
    has_object_map = (jnp.arange(N * S * S).reshape(N, S, S) % 3) == 0
    return pred_tensor, target_boxes, target_cls, has_object_map


def _check(name, losses, ref):
    for k in losses:
        assert bool(jnp.isfinite(losses[k])), f"{name}: non-finite loss for {k}"
        assert bool(jnp.allclose(losses[k], ref[k], rtol=1e-3, atol=1e-3)), \
            f"{name}: mismatch for {k}: {losses[k]} vs {ref[k]}"


if __name__ == "__main__":
    B, C = 2, 20
    l_coord, l_noobj = 5.0, 0.5
    key = jax.random.PRNGKey(0)
    k_small, k_med = jax.random.split(key, 2)

    # small case (single block, grid (1,1))
    N, S = 2, 4
    inputs = _make_inputs(k_small, N, S, B, C)
    losses = yolo_loss(*inputs, S=S, B=B, l_coord=l_coord, l_noobj=l_noobj)
    losses = jax.tree_util.tree_map(jax.block_until_ready, losses)
    ref = _reference_loss(*inputs, S=S, B=B, l_coord=l_coord, l_noobj=l_noobj)
    _check("small", losses, ref)

    # medium case: exercises the M-grid accumulator, cell padding and the
    # 2-shard "parallel" axis (2 TCs on v7x, serial elsewhere)
    N, S = 24, 14
    inputs = _make_inputs(k_med, N, S, B, C)
    losses = yolo_loss(*inputs, S=S, B=B, l_coord=l_coord, l_noobj=l_noobj)
    losses = jax.tree_util.tree_map(jax.block_until_ready, losses)
    ref = _reference_loss(*inputs, S=S, B=B, l_coord=l_coord, l_noobj=l_noobj)
    _check("medium", losses, ref)

    print("KERNEL_OK")
</pallas_src>

<mosaic_0001>
module attributes {stable_mosaic.version = 11 : i64} {
  func.func @kernel(%arg0: i32, %arg1: i32, %arg2: memref<30x1x128xf32, #tpu.memory_space<vmem>>, %arg3: memref<4x1x128xf32, #tpu.memory_space<vmem>>, %arg4: memref<20x1x128xf32, #tpu.memory_space<vmem>>, %arg5: memref<1x128xf32, #tpu.memory_space<vmem>>, %arg6: memref<8x128xf32, #tpu.memory_space<vmem>>, %arg7: memref<8x128xf32, #tpu.memory_space<vmem>>) attributes {dimension_semantics = [#tpu.dimension_semantics<parallel>, #tpu.dimension_semantics<arbitrary>], iteration_bounds = array<i64: 1, 1>, scalar_prefetch = 0 : i64, scratch_operands = 1 : i64, tpu.core_type = #tpu.core_type<tc>, window_params = [{transform_indices = @transform_0, window_bounds = array<i64: 30, 1, 128>}, {transform_indices = @transform_1, window_bounds = array<i64: 4, 1, 128>}, {transform_indices = @transform_2, window_bounds = array<i64: 20, 1, 128>}, {transform_indices = @transform_3, window_bounds = array<i64: 1, 128>}, {transform_indices = @transform_4, window_bounds = array<i64: 8, 128>}]} {
    %c0_i32 = arith.constant 0 : i32
    %0 = arith.cmpi eq, %arg1, %c0_i32 : i32
    %1 = arith.extui %0 : i1 to i32
    %c0_i32_0 = arith.constant 0 : i32
    %2 = arith.cmpi ne, %1, %c0_i32_0 : i32
    scf.if %2 {
      %cst_234 = arith.constant 0.000000e+00 : f32
      %414 = vector.broadcast %cst_234 : f32 to vector<8x128xf32>
      %c0_235 = arith.constant 0 : index
      %c0_236 = arith.constant 0 : index
      %415 = vector.load %arg7[%c0_235, %c0_236] : memref<8x128xf32, #tpu.memory_space<vmem>>, vector<8x128xf32>
      tpu.vector_store %arg7[%c0_235, %c0_236], %414 {strides = array<i32>} : memref<8x128xf32, #tpu.memory_space<vmem>>, vector<8x128xf32>,
    } else {
    }
    %c0 = arith.constant 0 : index
    %c0_1 = arith.constant 0 : index
    %3 = vector.load %arg5[%c0, %c0_1] : memref<1x128xf32, #tpu.memory_space<vmem>>, vector<1x128xf32>
    %cst = arith.constant 1.000000e+00 : f32
    %4 = vector.broadcast %cst : f32 to vector<1x128xf32>
    %5 = arith.subf %4, %3 : vector<1x128xf32>
    %c0_2 = arith.constant 0 : index
    %c0_3 = arith.constant 0 : index
    %c0_4 = arith.constant 0 : index
    %6 = vector.load %arg3[%c0_2, %c0_3, %c0_4] : memref<4x1x128xf32, #tpu.memory_space<vmem>>, vector<1x1x128xf32>
    %7 = vector.shape_cast %6 : vector<1x1x128xf32> to vector<1x128xf32>
    %c1 = arith.constant 1 : index
    %c0_5 = arith.constant 0 : index
    %c0_6 = arith.constant 0 : index
    %8 = vector.load %arg3[%c1, %c0_5, %c0_6] : memref<4x1x128xf32, #tpu.memory_space<vmem>>, vector<1x1x128xf32>
    %9 = vector.shape_cast %8 : vector<1x1x128xf32> to vector<1x128xf32>
    %c2 = arith.constant 2 : index
    %c0_7 = arith.constant 0 : index
    %c0_8 = arith.constant 0 : index
    %10 = vector.load %arg3[%c2, %c0_7, %c0_8] : memref<4x1x128xf32, #tpu.memory_space<vmem>>, vector<1x1x128xf32>
    %11 = vector.shape_cast %10 : vector<1x1x128xf32> to vector<1x128xf32>
    %c3 = arith.constant 3 : index
    %c0_9 = arith.constant 0 : index
    %c0_10 = arith.constant 0 : index
    %12 = vector.load %arg3[%c3, %c0_9, %c0_10] : memref<4x1x128xf32, #tpu.memory_space<vmem>>, vector<1x1x128xf32>
    %13 = vector.shape_cast %12 : vector<1x1x128xf32> to vector<1x128xf32>
    %cst_11 = arith.constant 2.500000e-01 : f32
    %14 = vector.broadcast %cst_11 : f32 to vector<1x128xf32>
    %15 = arith.mulf %7, %14 : vector<1x128xf32>
    %cst_12 = arith.constant 2.500000e-01 : f32
    %16 = vector.broadcast %cst_12 : f32 to vector<1x128xf32>
    %17 = arith.mulf %9, %16 : vector<1x128xf32>
    %cst_13 = arith.constant 5.000000e-01 : f32
    %18 = vector.broadcast %cst_13 : f32 to vector<1x128xf32>
    %19 = arith.mulf %18, %11 : vector<1x128xf32>
    %20 = arith.subf %15, %19 : vector<1x128xf32>
    %cst_14 = arith.constant 5.000000e-01 : f32
    %21 = vector.broadcast %cst_14 : f32 to vector<1x128xf32>
    %22 = arith.mulf %21, %13 : vector<1x128xf32>
    %23 = arith.subf %17, %22 : vector<1x128xf32>
    %cst_15 = arith.constant 5.000000e-01 : f32
    %24 = vector.broadcast %cst_15 : f32 to vector<1x128xf32>
    %25 = arith.mulf %24, %11 : vector<1x128xf32>
    %26 = arith.addf %15, %25 : vector<1x128xf32>
    %cst_16 = arith.constant 5.000000e-01 : f32
    %27 = vector.broadcast %cst_16 : f32 to vector<1x128xf32>
    %28 = arith.mulf %27, %13 : vector<1x128xf32>
    %29 = arith.addf %17, %28 : vector<1x128xf32>
    %30 = arith.subf %26, %20 : vector<1x128xf32>
    %31 = arith.subf %29, %23 : vector<1x128xf32>
    %32 = arith.mulf %30, %31 : vector<1x128xf32>
    %cst_17 = arith.constant 0.000000e+00 : f32
    %33 = vector.broadcast %cst_17 : f32 to vector<1x128xf32>
    %c0_18 = arith.constant 0 : index
    %c0_19 = arith.constant 0 : index
    %c0_20 = arith.constant 0 : index
    %34 = vector.load %arg2[%c0_18, %c0_19, %c0_20] : memref<30x1x128xf32, #tpu.memory_space<vmem>>, vector<1x1x128xf32>
    %35 = vector.shape_cast %34 : vector<1x1x128xf32> to vector<1x128xf32>
    %c1_21 = arith.constant 1 : index
    %c0_22 = arith.constant 0 : index
    %c0_23 = arith.constant 0 : index
    %36 = vector.load %arg2[%c1_21, %c0_22, %c0_23] : memref<30x1x128xf32, #tpu.memory_space<vmem>>, vector<1x1x128xf32>
    %37 = vector.shape_cast %36 : vector<1x1x128xf32> to vector<1x128xf32>
    %c2_24 = arith.constant 2 : index
    %c0_25 = arith.constant 0 : index
    %c0_26 = arith.constant 0 : index
    %38 = vector.load %arg2[%c2_24, %c0_25, %c0_26] : memref<30x1x128xf32, #tpu.memory_space<vmem>>, vector<1x1x128xf32>
    %39 = vector.shape_cast %38 : vector<1x1x128xf32> to vector<1x128xf32>
    %c3_27 = arith.constant 3 : index
    %c0_28 = arith.constant 0 : index
    %c0_29 = arith.constant 0 : index
    %40 = vector.load %arg2[%c3_27, %c0_28, %c0_29] : memref<30x1x128xf32, #tpu.memory_space<vmem>>, vector<1x1x128xf32>
    %41 = vector.shape_cast %40 : vector<1x1x128xf32> to vector<1x128xf32>
    %c4 = arith.constant 4 : index
    %c0_30 = arith.constant 0 : index
    %c0_31 = arith.constant 0 : index
    %42 = vector.load %arg2[%c4, %c0_30, %c0_31] : memref<30x1x128xf32, #tpu.memory_space<vmem>>, vector<1x1x128xf32>
    %43 = vector.shape_cast %42 : vector<1x1x128xf32> to vector<1x128xf32>
    %44 = arith.mulf %43, %43 : vector<1x128xf32>
    %45 = arith.addf %33, %44 : vector<1x128xf32>
    %cst_32 = arith.constant 2.500000e-01 : f32
    %46 = vector.broadcast %cst_32 : f32 to vector<1x128xf32>
    %47 = arith.mulf %35, %46 : vector<1x128xf32>
    %cst_33 = arith.constant 2.500000e-01 : f32
    %48 = vector.broadcast %cst_33 : f32 to vector<1x128xf32>
    %49 = arith.mulf %37, %48 : vector<1x128xf32>
    %cst_34 = arith.constant 5.000000e-01 : f32
    %50 = vector.broadcast %cst_34 : f32 to vector<1x128xf32>
    %51 = arith.mulf %50, %39 : vector<1x128xf32>
    %52 = arith.subf %47, %51 : vector<1x128xf32>
    %cst_35 = arith.constant 5.000000e-01 : f32
    %53 = vector.broadcast %cst_35 : f32 to vector<1x128xf32>
    %54 = arith.mulf %53, %41 : vector<1x128xf32>
    %55 = arith.subf %49, %54 : vector<1x128xf32>
    %cst_36 = arith.constant 5.000000e-01 : f32
    %56 = vector.broadcast %cst_36 : f32 to vector<1x128xf32>
    %57 = arith.mulf %56, %39 : vector<1x128xf32>
    %58 = arith.addf %47, %57 : vector<1x128xf32>
    %cst_37 = arith.constant 5.000000e-01 : f32
    %59 = vector.broadcast %cst_37 : f32 to vector<1x128xf32>
    %60 = arith.mulf %59, %41 : vector<1x128xf32>
    %61 = arith.addf %49, %60 : vector<1x128xf32>
    %62 = arith.minimumf %58, %26 : vector<1x128xf32>
    %63 = arith.maximumf %52, %20 : vector<1x128xf32>
    %64 = arith.subf %62, %63 : vector<1x128xf32>
    %cst_38 = arith.constant 0.000000e+00 : f32
    %65 = vector.broadcast %cst_38 : f32 to vector<1x128xf32>
    %66 = arith.maximumf %64, %65 : vector<1x128xf32>
    %67 = arith.minimumf %61, %29 : vector<1x128xf32>
    %68 = arith.maximumf %55, %23 : vector<1x128xf32>
    %69 = arith.subf %67, %68 : vector<1x128xf32>
    %cst_39 = arith.constant 0.000000e+00 : f32
    %70 = vector.broadcast %cst_39 : f32 to vector<1x128xf32>
    %71 = arith.maximumf %69, %70 : vector<1x128xf32>
    %72 = arith.mulf %66, %71 : vector<1x128xf32>
    %73 = arith.subf %58, %52 : vector<1x128xf32>
    %74 = arith.subf %61, %55 : vector<1x128xf32>
    %75 = arith.mulf %73, %74 : vector<1x128xf32>
    %76 = arith.addf %75, %32 : vector<1x128xf32>
    %77 = arith.subf %76, %72 : vector<1x128xf32>
    %cst_40 = arith.constant 9.99999971E-10 : f32
    %78 = vector.broadcast %cst_40 : f32 to vector<1x128xf32>
    %79 = arith.addf %77, %78 : vector<1x128xf32>
    %80 = arith.divf %72, %79 : vector<1x128xf32>
    %c5 = arith.constant 5 : index
    %c0_41 = arith.constant 0 : index
    %c0_42 = arith.constant 0 : index
    %81 = vector.load %arg2[%c5, %c0_41, %c0_42] : memref<30x1x128xf32, #tpu.memory_space<vmem>>, vector<1x1x128xf32>
    %82 = vector.shape_cast %81 : vector<1x1x128xf32> to vector<1x128xf32>
    %c6 = arith.constant 6 : index
    %c0_43 = arith.constant 0 : index
    %c0_44 = arith.constant 0 : index
    %83 = vector.load %arg2[%c6, %c0_43, %c0_44] : memref<30x1x128xf32, #tpu.memory_space<vmem>>, vector<1x1x128xf32>
    %84 = vector.shape_cast %83 : vector<1x1x128xf32> to vector<1x128xf32>
    %c7 = arith.constant 7 : index
    %c0_45 = arith.constant 0 : index
    %c0_46 = arith.constant 0 : index
    %85 = vector.load %arg2[%c7, %c0_45, %c0_46] : memref<30x1x128xf32, #tpu.memory_space<vmem>>, vector<1x1x128xf32>
    %86 = vector.shape_cast %85 : vector<1x1x128xf32> to vector<1x128xf32>
    %c8 = arith.constant 8 : index
    %c0_47 = arith.constant 0 : index
    %c0_48 = arith.constant 0 : index
    %87 = vector.load %arg2[%c8, %c0_47, %c0_48] : memref<30x1x128xf32, #tpu.memory_space<vmem>>, vector<1x1x128xf32>
    %88 = vector.shape_cast %87 : vector<1x1x128xf32> to vector<1x128xf32>
    %c9 = arith.constant 9 : index
    %c0_49 = arith.constant 0 : index
    %c0_50 = arith.constant 0 : index
    %89 = vector.load %arg2[%c9, %c0_49, %c0_50] : memref<30x1x128xf32, #tpu.memory_space<vmem>>, vector<1x1x128xf32>
    %90 = vector.shape_cast %89 : vector<1x1x128xf32> to vector<1x128xf32>
    %91 = arith.mulf %90, %90 : vector<1x128xf32>
    %92 = arith.addf %45, %91 : vector<1x128xf32>
    %cst_51 = arith.constant 2.500000e-01 : f32
    %93 = vector.broadcast %cst_51 : f32 to vector<1x128xf32>
    %94 = arith.mulf %82, %93 : vector<1x128xf32>
    %cst_52 = arith.constant 2.500000e-01 : f32
    %95 = vector.broadcast %cst_52 : f32 to vector<1x128xf32>
    %96 = arith.mulf %84, %95 : vector<1x128xf32>
    %cst_53 = arith.constant 5.000000e-01 : f32
    %97 = vector.broadcast %cst_53 : f32 to vector<1x128xf32>
    %98 = arith.mulf %97, %86 : vector<1x128xf32>
    %99 = arith.subf %94, %98 : vector<1x128xf32>
    %cst_54 = arith.constant 5.000000e-01 : f32
    %100 = vector.broadcast %cst_54 : f32 to vector<1x128xf32>
    %101 = arith.mulf %100, %88 : vector<1x128xf32>
    %102 = arith.subf %96, %101 : vector<1x128xf32>
    %cst_55 = arith.constant 5.000000e-01 : f32
    %103 = vector.broadcast %cst_55 : f32 to vector<1x128xf32>
    %104 = arith.mulf %103, %86 : vector<1x128xf32>
    %105 = arith.addf %94, %104 : vector<1x128xf32>
    %cst_56 = arith.constant 5.000000e-01 : f32
    %106 = vector.broadcast %cst_56 : f32 to vector<1x128xf32>
    %107 = arith.mulf %106, %88 : vector<1x128xf32>
    %108 = arith.addf %96, %107 : vector<1x128xf32>
    %109 = arith.minimumf %105, %26 : vector<1x128xf32>
    %110 = arith.maximumf %99, %20 : vector<1x128xf32>
    %111 = arith.subf %109, %110 : vector<1x128xf32>
    %cst_57 = arith.constant 0.000000e+00 : f32
    %112 = vector.broadcast %cst_57 : f32 to vector<1x128xf32>
    %113 = arith.maximumf %111, %112 : vector<1x128xf32>
    %114 = arith.minimumf %108, %29 : vector<1x128xf32>
    %115 = arith.maximumf %102, %23 : vector<1x128xf32>
    %116 = arith.subf %114, %115 : vector<1x128xf32>
    %cst_58 = arith.constant 0.000000e+00 : f32
    %117 = vector.broadcast %cst_58 : f32 to vector<1x128xf32>
    %118 = arith.maximumf %116, %117 : vector<1x128xf32>
    %119 = arith.mulf %113, %118 : vector<1x128xf32>
    %120 = arith.subf %105, %99 : vector<1x128xf32>
    %121 = arith.subf %108, %102 : vector<1x128xf32>
    %122 = arith.mulf %120, %121 : vector<1x128xf32>
    %123 = arith.addf %122, %32 : vector<1x128xf32>
    %124 = arith.subf %123, %119 : vector<1x128xf32>
    %cst_59 = arith.constant 9.99999971E-10 : f32
    %125 = vector.broadcast %cst_59 : f32 to vector<1x128xf32>
    %126 = arith.addf %124, %125 : vector<1x128xf32>
    %127 = arith.divf %119, %126 : vector<1x128xf32>
    %128 = arith.cmpf ogt, %127, %80 : vector<1x128xf32>
    %129 = arith.select %128, %99, %52 : vector<1x128xi1>, vector<1x128xf32>
    %130 = arith.select %128, %102, %55 : vector<1x128xi1>, vector<1x128xf32>
    %131 = arith.select %128, %105, %58 : vector<1x128xi1>, vector<1x128xf32>
    %132 = arith.select %128, %108, %61 : vector<1x128xi1>, vector<1x128xf32>
    %133 = arith.select %128, %90, %43 : vector<1x128xi1>, vector<1x128xf32>
    %134 = arith.select %128, %127, %80 : vector<1x128xi1>, vector<1x128xf32>
    %135 = arith.subf %129, %20 : vector<1x128xf32>
    %136 = arith.subf %130, %23 : vector<1x128xf32>
    %137 = arith.subf %131, %26 : vector<1x128xf32>
    %138 = arith.subf %132, %29 : vector<1x128xf32>
    %139 = arith.mulf %135, %135 : vector<1x128xf32>
    %140 = arith.mulf %136, %136 : vector<1x128xf32>
    %141 = arith.addf %139, %140 : vector<1x128xf32>
    %142 = arith.mulf %137, %137 : vector<1x128xf32>
    %143 = arith.addf %141, %142 : vector<1x128xf32>
    %144 = arith.mulf %138, %138 : vector<1x128xf32>
    %145 = arith.addf %143, %144 : vector<1x128xf32>
    %146 = arith.mulf %3, %145 : vector<1x128xf32>
    %147 = arith.subf %133, %134 : vector<1x128xf32>
    %148 = arith.mulf %147, %147 : vector<1x128xf32>
    %149 = arith.mulf %3, %148 : vector<1x128xf32>
    %c10 = arith.constant 10 : index
    %c0_60 = arith.constant 0 : index
    %c0_61 = arith.constant 0 : index
    %150 = vector.load %arg2[%c10, %c0_60, %c0_61] : memref<30x1x128xf32, #tpu.memory_space<vmem>>, vector<1x1x128xf32>
    %151 = vector.shape_cast %150 : vector<1x1x128xf32> to vector<1x128xf32>
    %c11 = arith.constant 11 : index
    %c0_62 = arith.constant 0 : index
    %c0_63 = arith.constant 0 : index
    %152 = vector.load %arg2[%c11, %c0_62, %c0_63] : memref<30x1x128xf32, #tpu.memory_space<vmem>>, vector<1x1x128xf32>
    %153 = vector.shape_cast %152 : vector<1x1x128xf32> to vector<1x128xf32>
    %154 = arith.maximumf %151, %153 : vector<1x128xf32>
    %c12 = arith.constant 12 : index
    %c0_64 = arith.constant 0 : index
    %c0_65 = arith.constant 0 : index
    %155 = vector.load %arg2[%c12, %c0_64, %c0_65] : memref<30x1x128xf32, #tpu.memory_space<vmem>>, vector<1x1x128xf32>
    %156 = vector.shape_cast %155 : vector<1x1x128xf32> to vector<1x128xf32>
    %157 = arith.maximumf %154, %156 : vector<1x128xf32>
    %c13 = arith.constant 13 : index
    %c0_66 = arith.constant 0 : index
    %c0_67 = arith.constant 0 : index
    %158 = vector.load %arg2[%c13, %c0_66, %c0_67] : memref<30x1x128xf32, #tpu.memory_space<vmem>>, vector<1x1x128xf32>
    %159 = vector.shape_cast %158 : vector<1x1x128xf32> to vector<1x128xf32>
    %160 = arith.maximumf %157, %159 : vector<1x128xf32>
    %c14 = arith.constant 14 : index
    %c0_68 = arith.constant 0 : index
    %c0_69 = arith.constant 0 : index
    %161 = vector.load %arg2[%c14, %c0_68, %c0_69] : memref<30x1x128xf32, #tpu.memory_space<vmem>>, vector<1x1x128xf32>
    %162 = vector.shape_cast %161 : vector<1x1x128xf32> to vector<1x128xf32>
    %163 = arith.maximumf %160, %162 : vector<1x128xf32>
    %c15 = arith.constant 15 : index
    %c0_70 = arith.constant 0 : index
    %c0_71 = arith.constant 0 : index
    %164 = vector.load %arg2[%c15, %c0_70, %c0_71] : memref<30x1x128xf32, #tpu.memory_space<vmem>>, vector<1x1x128xf32>
    %165 = vector.shape_cast %164 : vector<1x1x128xf32> to vector<1x128xf32>
    %166 = arith.maximumf %163, %165 : vector<1x128xf32>
    %c16 = arith.constant 16 : index
    %c0_72 = arith.constant 0 : index
    %c0_73 = arith.constant 0 : index
    %167 = vector.load %arg2[%c16, %c0_72, %c0_73] : memref<30x1x128xf32, #tpu.memory_space<vmem>>, vector<1x1x128xf32>
    %168 = vector.shape_cast %167 : vector<1x1x128xf32> to vector<1x128xf32>
    %169 = arith.maximumf %166, %168 : vector<1x128xf32>
    %c17 = arith.constant 17 : index
    %c0_74 = arith.constant 0 : index
    %c0_75 = arith.constant 0 : index
    %170 = vector.load %arg2[%c17, %c0_74, %c0_75] : memref<30x1x128xf32, #tpu.memory_space<vmem>>, vector<1x1x128xf32>
    %171 = vector.shape_cast %170 : vector<1x1x128xf32> to vector<1x128xf32>
    %172 = arith.maximumf %169, %171 : vector<1x128xf32>
    %c18 = arith.constant 18 : index
    %c0_76 = arith.constant 0 : index
    %c0_77 = arith.constant 0 : index
    %173 = vector.load %arg2[%c18, %c0_76, %c0_77] : memref<30x1x128xf32, #tpu.memory_space<vmem>>, vector<1x1x128xf32>
    %174 = vector.shape_cast %173 : vector<1x1x128xf32> to vector<1x128xf32>
    %175 = arith.maximumf %172, %174 : vector<1x128xf32>
    %c19 = arith.constant 19 : index
    %c0_78 = arith.constant 0 : index
    %c0_79 = arith.constant 0 : index
    %176 = vector.load %arg2[%c19, %c0_78, %c0_79] : memref<30x1x128xf32, #tpu.memory_space<vmem>>, vector<1x1x128xf32>
    %177 = vector.shape_cast %176 : vector<1x1x128xf32> to vector<1x128xf32>
    %178 = arith.maximumf %175, %177 : vector<1x128xf32>
    %c20 = arith.constant 20 : index
    %c0_80 = arith.constant 0 : index
    %c0_81 = arith.constant 0 : index
    %179 = vector.load %arg2[%c20, %c0_80, %c0_81] : memref<30x1x128xf32, #tpu.memory_space<vmem>>, vector<1x1x128xf32>
    %180 = vector.shape_cast %179 : vector<1x1x128xf32> to vector<1x128xf32>
    %181 = arith.maximumf %178, %180 : vector<1x128xf32>
    %c21 = arith.constant 21 : index
    %c0_82 = arith.constant 0 : index
    %c0_83 = arith.constant 0 : index
    %182 = vector.load %arg2[%c21, %c0_82, %c0_83] : memref<30x1x128xf32, #tpu.memory_space<vmem>>, vector<1x1x128xf32>
    %183 = vector.shape_cast %182 : vector<1x1x128xf32> to vector<1x128xf32>
    %184 = arith.maximumf %181, %183 : vector<1x128xf32>
    %c22 = arith.constant 22 : index
    %c0_84 = arith.constant 0 : index
    %c0_85 = arith.constant 0 : index
    %185 = vector.load %arg2[%c22, %c0_84, %c0_85] : memref<30x1x128xf32, #tpu.memory_space<vmem>>, vector<1x1x128xf32>
    %186 = vector.shape_cast %185 : vector<1x1x128xf32> to vector<1x128xf32>
    %187 = arith.maximumf %184, %186 : vector<1x128xf32>
    %c23 = arith.constant 23 : index
    %c0_86 = arith.constant 0 : index
    %c0_87 = arith.constant 0 : index
    %188 = vector.load %arg2[%c23, %c0_86, %c0_87] : memref<30x1x128xf32, #tpu.memory_space<vmem>>, vector<1x1x128xf32>
    %189 = vector.shape_cast %188 : vector<1x1x128xf32> to vector<1x128xf32>
    %190 = arith.maximumf %187, %189 : vector<1x128xf32>
    %c24 = arith.constant 24 : index
    %c0_88 = arith.constant 0 : index
    %c0_89 = arith.constant 0 : index
    %191 = vector.load %arg2[%c24, %c0_88, %c0_89] : memref<30x1x128xf32, #tpu.memory_space<vmem>>, vector<1x1x128xf32>
    %192 = vector.shape_cast %191 : vector<1x1x128xf32> to vector<1x128xf32>
    %193 = arith.maximumf %190, %192 : vector<1x128xf32>
    %c25 = arith.constant 25 : index
    %c0_90 = arith.constant 0 : index
    %c0_91 = arith.constant 0 : index
    %194 = vector.load %arg2[%c25, %c0_90, %c0_91] : memref<30x1x128xf32, #tpu.memory_space<vmem>>, vector<1x1x128xf32>
    %195 = vector.shape_cast %194 : vector<1x1x128xf32> to vector<1x128xf32>
    %196 = arith.maximumf %193, %195 : vector<1x128xf32>
    %c26 = arith.constant 26 : index
    %c0_92 = arith.constant 0 : index
    %c0_93 = arith.constant 0 : index
    %197 = vector.load %arg2[%c26, %c0_92, %c0_93] : memref<30x1x128xf32, #tpu.memory_space<vmem>>, vector<1x1x128xf32>
    %198 = vector.shape_cast %197 : vector<1x1x128xf32> to vector<1x128xf32>
    %199 = arith.maximumf %196, %198 : vector<1x128xf32>
    %c27 = arith.constant 27 : index
    %c0_94 = arith.constant 0 : index
    %c0_95 = arith.constant 0 : index
    %200 = vector.load %arg2[%c27, %c0_94, %c0_95] : memref<30x1x128xf32, #tpu.memory_space<vmem>>, vector<1x1x128xf32>
    %201 = vector.shape_cast %200 : vector<1x1x128xf32> to vector<1x128xf32>
    %202 = arith.maximumf %199, %201 : vector<1x128xf32>
    %c28 = arith.constant 28 : index
    %c0_96 = arith.constant 0 : index
    %c0_97 = arith.constant 0 : index
    %203 = vector.load %arg2[%c28, %c0_96, %c0_97] : memref<30x1x128xf32, #tpu.memory_space<vmem>>, vector<1x1x128xf32>
    %204 = vector.shape_cast %203 : vector<1x1x128xf32> to vector<1x128xf32>
    %205 = arith.maximumf %202, %204 : vector<1x128xf32>
    %c29 = arith.constant 29 : index
    %c0_98 = arith.constant 0 : index
    %c0_99 = arith.constant 0 : index
    %206 = vector.load %arg2[%c29, %c0_98, %c0_99] : memref<30x1x128xf32, #tpu.memory_space<vmem>>, vector<1x1x128xf32>
    %207 = vector.shape_cast %206 : vector<1x1x128xf32> to vector<1x128xf32>
    %208 = arith.maximumf %205, %207 : vector<1x128xf32>
    %cst_100 = arith.constant 0.000000e+00 : f32
    %209 = vector.broadcast %cst_100 : f32 to vector<1x128xf32>
    %cst_101 = arith.constant 0.000000e+00 : f32
    %210 = vector.broadcast %cst_101 : f32 to vector<1x128xf32>
    %c10_102 = arith.constant 10 : index
    %c0_103 = arith.constant 0 : index
    %c0_104 = arith.constant 0 : index
    %211 = vector.load %arg2[%c10_102, %c0_103, %c0_104] : memref<30x1x128xf32, #tpu.memory_space<vmem>>, vector<1x1x128xf32>
    %212 = vector.shape_cast %211 : vector<1x1x128xf32> to vector<1x128xf32>
    %213 = arith.subf %212, %208 : vector<1x128xf32>
    %214 = math.exp %213 : vector<1x128xf32>
    %215 = arith.addf %209, %214 : vector<1x128xf32>
    %c0_105 = arith.constant 0 : index
    %c0_106 = arith.constant 0 : index
    %c0_107 = arith.constant 0 : index
    %216 = vector.load %arg4[%c0_105, %c0_106, %c0_107] : memref<20x1x128xf32, #tpu.memory_space<vmem>>, vector<1x1x128xf32>
    %217 = vector.shape_cast %216 : vector<1x1x128xf32> to vector<1x128xf32>
    %218 = arith.mulf %217, %212 : vector<1x128xf32>
    %219 = arith.addf %210, %218 : vector<1x128xf32>
    %c11_108 = arith.constant 11 : index
    %c0_109 = arith.constant 0 : index
    %c0_110 = arith.constant 0 : index
    %220 = vector.load %arg2[%c11_108, %c0_109, %c0_110] : memref<30x1x128xf32, #tpu.memory_space<vmem>>, vector<1x1x128xf32>
    %221 = vector.shape_cast %220 : vector<1x1x128xf32> to vector<1x128xf32>
    %222 = arith.subf %221, %208 : vector<1x128xf32>
    %223 = math.exp %222 : vector<1x128xf32>
    %224 = arith.addf %215, %223 : vector<1x128xf32>
    %c1_111 = arith.constant 1 : index
    %c0_112 = arith.constant 0 : index
    %c0_113 = arith.constant 0 : index
    %225 = vector.load %arg4[%c1_111, %c0_112, %c0_113] : memref<20x1x128xf32, #tpu.memory_space<vmem>>, vector<1x1x128xf32>
    %226 = vector.shape_cast %225 : vector<1x1x128xf32> to vector<1x128xf32>
    %227 = arith.mulf %226, %221 : vector<1x128xf32>
    %228 = arith.addf %219, %227 : vector<1x128xf32>
    %c12_114 = arith.constant 12 : index
    %c0_115 = arith.constant 0 : index
    %c0_116 = arith.constant 0 : index
    %229 = vector.load %arg2[%c12_114, %c0_115, %c0_116] : memref<30x1x128xf32, #tpu.memory_space<vmem>>, vector<1x1x128xf32>
    %230 = vector.shape_cast %229 : vector<1x1x128xf32> to vector<1x128xf32>
    %231 = arith.subf %230, %208 : vector<1x128xf32>
    %232 = math.exp %231 : vector<1x128xf32>
    %233 = arith.addf %224, %232 : vector<1x128xf32>
    %c2_117 = arith.constant 2 : index
    %c0_118 = arith.constant 0 : index
    %c0_119 = arith.constant 0 : index
    %234 = vector.load %arg4[%c2_117, %c0_118, %c0_119] : memref<20x1x128xf32, #tpu.memory_space<vmem>>, vector<1x1x128xf32>
    %235 = vector.shape_cast %234 : vector<1x1x128xf32> to vector<1x128xf32>
    %236 = arith.mulf %235, %230 : vector<1x128xf32>
    %237 = arith.addf %228, %236 : vector<1x128xf32>
    %c13_120 = arith.constant 13 : index
    %c0_121 = arith.constant 0 : index
    %c0_122 = arith.constant 0 : index
    %238 = vector.load %arg2[%c13_120, %c0_121, %c0_122] : memref<30x1x128xf32, #tpu.memory_space<vmem>>, vector<1x1x128xf32>
    %239 = vector.shape_cast %238 : vector<1x1x128xf32> to vector<1x128xf32>
    %240 = arith.subf %239, %208 : vector<1x128xf32>
    %241 = math.exp %240 : vector<1x128xf32>
    %242 = arith.addf %233, %241 : vector<1x128xf32>
    %c3_123 = arith.constant 3 : index
    %c0_124 = arith.constant 0 : index
    %c0_125 = arith.constant 0 : index
    %243 = vector.load %arg4[%c3_123, %c0_124, %c0_125] : memref<20x1x128xf32, #tpu.memory_space<vmem>>, vector<1x1x128xf32>
    %244 = vector.shape_cast %243 : vector<1x1x128xf32> to vector<1x128xf32>
    %245 = arith.mulf %244, %239 : vector<1x128xf32>
    %246 = arith.addf %237, %245 : vector<1x128xf32>
    %c14_126 = arith.constant 14 : index
    %c0_127 = arith.constant 0 : index
    %c0_128 = arith.constant 0 : index
    %247 = vector.load %arg2[%c14_126, %c0_127, %c0_128] : memref<30x1x128xf32, #tpu.memory_space<vmem>>, vector<1x1x128xf32>
    %248 = vector.shape_cast %247 : vector<1x1x128xf32> to vector<1x128xf32>
    %249 = arith.subf %248, %208 : vector<1x128xf32>
    %250 = math.exp %249 : vector<1x128xf32>
    %251 = arith.addf %242, %250 : vector<1x128xf32>
    %c4_129 = arith.constant 4 : index
    %c0_130 = arith.constant 0 : index
    %c0_131 = arith.constant 0 : index
    %252 = vector.load %arg4[%c4_129, %c0_130, %c0_131] : memref<20x1x128xf32, #tpu.memory_space<vmem>>, vector<1x1x128xf32>
    %253 = vector.shape_cast %252 : vector<1x1x128xf32> to vector<1x128xf32>
    %254 = arith.mulf %253, %248 : vector<1x128xf32>
    %255 = arith.addf %246, %254 : vector<1x128xf32>
    %c15_132 = arith.constant 15 : index
    %c0_133 = arith.constant 0 : index
    %c0_134 = arith.constant 0 : index
    %256 = vector.load %arg2[%c15_132, %c0_133, %c0_134] : memref<30x1x128xf32, #tpu.memory_space<vmem>>, vector<1x1x128xf32>
    %257 = vector.shape_cast %256 : vector<1x1x128xf32> to vector<1x128xf32>
    %258 = arith.subf %257, %208 : vector<1x128xf32>
    %259 = math.exp %258 : vector<1x128xf32>
    %260 = arith.addf %251, %259 : vector<1x128xf32>
    %c5_135 = arith.constant 5 : index
    %c0_136 = arith.constant 0 : index
    %c0_137 = arith.constant 0 : index
    %261 = vector.load %arg4[%c5_135, %c0_136, %c0_137] : memref<20x1x128xf32, #tpu.memory_space<vmem>>, vector<1x1x128xf32>
    %262 = vector.shape_cast %261 : vector<1x1x128xf32> to vector<1x128xf32>
    %263 = arith.mulf %262, %257 : vector<1x128xf32>
    %264 = arith.addf %255, %263 : vector<1x128xf32>
    %c16_138 = arith.constant 16 : index
    %c0_139 = arith.constant 0 : index
    %c0_140 = arith.constant 0 : index
    %265 = vector.load %arg2[%c16_138, %c0_139, %c0_140] : memref<30x1x128xf32, #tpu.memory_space<vmem>>, vector<1x1x128xf32>
    %266 = vector.shape_cast %265 : vector<1x1x128xf32> to vector<1x128xf32>
    %267 = arith.subf %266, %208 : vector<1x128xf32>
    %268 = math.exp %267 : vector<1x128xf32>
    %269 = arith.addf %260, %268 : vector<1x128xf32>
    %c6_141 = arith.constant 6 : index
    %c0_142 = arith.constant 0 : index
    %c0_143 = arith.constant 0 : index
    %270 = vector.load %arg4[%c6_141, %c0_142, %c0_143] : memref<20x1x128xf32, #tpu.memory_space<vmem>>, vector<1x1x128xf32>
    %271 = vector.shape_cast %270 : vector<1x1x128xf32> to vector<1x128xf32>
    %272 = arith.mulf %271, %266 : vector<1x128xf32>
    %273 = arith.addf %264, %272 : vector<1x128xf32>
    %c17_144 = arith.constant 17 : index
    %c0_145 = arith.constant 0 : index
    %c0_146 = arith.constant 0 : index
    %274 = vector.load %arg2[%c17_144, %c0_145, %c0_146] : memref<30x1x128xf32, #tpu.memory_space<vmem>>, vector<1x1x128xf32>
    %275 = vector.shape_cast %274 : vector<1x1x128xf32> to vector<1x128xf32>
    %276 = arith.subf %275, %208 : vector<1x128xf32>
    %277 = math.exp %276 : vector<1x128xf32>
    %278 = arith.addf %269, %277 : vector<1x128xf32>
    %c7_147 = arith.constant 7 : index
    %c0_148 = arith.constant 0 : index
    %c0_149 = arith.constant 0 : index
    %279 = vector.load %arg4[%c7_147, %c0_148, %c0_149] : memref<20x1x128xf32, #tpu.memory_space<vmem>>, vector<1x1x128xf32>
    %280 = vector.shape_cast %279 : vector<1x1x128xf32> to vector<1x128xf32>
    %281 = arith.mulf %280, %275 : vector<1x128xf32>
    %282 = arith.addf %273, %281 : vector<1x128xf32>
    %c18_150 = arith.constant 18 : index
    %c0_151 = arith.constant 0 : index
    %c0_152 = arith.constant 0 : index
    %283 = vector.load %arg2[%c18_150, %c0_151, %c0_152] : memref<30x1x128xf32, #tpu.memory_space<vmem>>, vector<1x1x128xf32>
    %284 = vector.shape_cast %283 : vector<1x1x128xf32> to vector<1x128xf32>
    %285 = arith.subf %284, %208 : vector<1x128xf32>
    %286 = math.exp %285 : vector<1x128xf32>
    %287 = arith.addf %278, %286 : vector<1x128xf32>
    %c8_153 = arith.constant 8 : index
    %c0_154 = arith.constant 0 : index
    %c0_155 = arith.constant 0 : index
    %288 = vector.load %arg4[%c8_153, %c0_154, %c0_155] : memref<20x1x128xf32, #tpu.memory_space<vmem>>, vector<1x1x128xf32>
    %289 = vector.shape_cast %288 : vector<1x1x128xf32> to vector<1x128xf32>
    %290 = arith.mulf %289, %284 : vector<1x128xf32>
    %291 = arith.addf %282, %290 : vector<1x128xf32>
    %c19_156 = arith.constant 19 : index
    %c0_157 = arith.constant 0 : index
    %c0_158 = arith.constant 0 : index
    %292 = vector.load %arg2[%c19_156, %c0_157, %c0_158] : memref<30x1x128xf32, #tpu.memory_space<vmem>>, vector<1x1x128xf32>
    %293 = vector.shape_cast %292 : vector<1x1x128xf32> to vector<1x128xf32>
    %294 = arith.subf %293, %208 : vector<1x128xf32>
    %295 = math.exp %294 : vector<1x128xf32>
    %296 = arith.addf %287, %295 : vector<1x128xf32>
    %c9_159 = arith.constant 9 : index
    %c0_160 = arith.constant 0 : index
    %c0_161 = arith.constant 0 : index
    %297 = vector.load %arg4[%c9_159, %c0_160, %c0_161] : memref<20x1x128xf32, #tpu.memory_space<vmem>>, vector<1x1x128xf32>
    %298 = vector.shape_cast %297 : vector<1x1x128xf32> to vector<1x128xf32>
    %299 = arith.mulf %298, %293 : vector<1x128xf32>
    %300 = arith.addf %291, %299 : vector<1x128xf32>
    %c20_162 = arith.constant 20 : index
    %c0_163 = arith.constant 0 : index
    %c0_164 = arith.constant 0 : index
    %301 = vector.load %arg2[%c20_162, %c0_163, %c0_164] : memref<30x1x128xf32, #tpu.memory_space<vmem>>, vector<1x1x128xf32>
    %302 = vector.shape_cast %301 : vector<1x1x128xf32> to vector<1x128xf32>
    %303 = arith.subf %302, %208 : vector<1x128xf32>
    %304 = math.exp %303 : vector<1x128xf32>
    %305 = arith.addf %296, %304 : vector<1x128xf32>
    %c10_165 = arith.constant 10 : index
    %c0_166 = arith.constant 0 : index
    %c0_167 = arith.constant 0 : index
    %306 = vector.load %arg4[%c10_165, %c0_166, %c0_167] : memref<20x1x128xf32, #tpu.memory_space<vmem>>, vector<1x1x128xf32>
    %307 = vector.shape_cast %306 : vector<1x1x128xf32> to vector<1x128xf32>
    %308 = arith.mulf %307, %302 : vector<1x128xf32>
    %309 = arith.addf %300, %308 : vector<1x128xf32>
    %c21_168 = arith.constant 21 : index
    %c0_169 = arith.constant 0 : index
    %c0_170 = arith.constant 0 : index
    %310 = vector.load %arg2[%c21_168, %c0_169, %c0_170] : memref<30x1x128xf32, #tpu.memory_space<vmem>>, vector<1x1x128xf32>
    %311 = vector.shape_cast %310 : vector<1x1x128xf32> to vector<1x128xf32>
    %312 = arith.subf %311, %208 : vector<1x128xf32>
    %313 = math.exp %312 : vector<1x128xf32>
    %314 = arith.addf %305, %313 : vector<1x128xf32>
    %c11_171 = arith.constant 11 : index
    %c0_172 = arith.constant 0 : index
    %c0_173 = arith.constant 0 : index
    %315 = vector.load %arg4[%c11_171, %c0_172, %c0_173] : memref<20x1x128xf32, #tpu.memory_space<vmem>>, vector<1x1x128xf32>
    %316 = vector.shape_cast %315 : vector<1x1x128xf32> to vector<1x128xf32>
    %317 = arith.mulf %316, %311 : vector<1x128xf32>
    %318 = arith.addf %309, %317 : vector<1x128xf32>
    %c22_174 = arith.constant 22 : index
    %c0_175 = arith.constant 0 : index
    %c0_176 = arith.constant 0 : index
    %319 = vector.load %arg2[%c22_174, %c0_175, %c0_176] : memref<30x1x128xf32, #tpu.memory_space<vmem>>, vector<1x1x128xf32>
    %320 = vector.shape_cast %319 : vector<1x1x128xf32> to vector<1x128xf32>
    %321 = arith.subf %320, %208 : vector<1x128xf32>
    %322 = math.exp %321 : vector<1x128xf32>
    %323 = arith.addf %314, %322 : vector<1x128xf32>
    %c12_177 = arith.constant 12 : index
    %c0_178 = arith.constant 0 : index
    %c0_179 = arith.constant 0 : index
    %324 = vector.load %arg4[%c12_177, %c0_178, %c0_179] : memref<20x1x128xf32, #tpu.memory_space<vmem>>, vector<1x1x128xf32>
    %325 = vector.shape_cast %324 : vector<1x1x128xf32> to vector<1x128xf32>
    %326 = arith.mulf %325, %320 : vector<1x128xf32>
    %327 = arith.addf %318, %326 : vector<1x128xf32>
    %c23_180 = arith.constant 23 : index
    %c0_181 = arith.constant 0 : index
    %c0_182 = arith.constant 0 : index
    %328 = vector.load %arg2[%c23_180, %c0_181, %c0_182] : memref<30x1x128xf32, #tpu.memory_space<vmem>>, vector<1x1x128xf32>
    %329 = vector.shape_cast %328 : vector<1x1x128xf32> to vector<1x128xf32>
    %330 = arith.subf %329, %208 : vector<1x128xf32>
    %331 = math.exp %330 : vector<1x128xf32>
    %332 = arith.addf %323, %331 : vector<1x128xf32>
    %c13_183 = arith.constant 13 : index
    %c0_184 = arith.constant 0 : index
    %c0_185 = arith.constant 0 : index
    %333 = vector.load %arg4[%c13_183, %c0_184, %c0_185] : memref<20x1x128xf32, #tpu.memory_space<vmem>>, vector<1x1x128xf32>
    %334 = vector.shape_cast %333 : vector<1x1x128xf32> to vector<1x128xf32>
    %335 = arith.mulf %334, %329 : vector<1x128xf32>
    %336 = arith.addf %327, %335 : vector<1x128xf32>
    %c24_186 = arith.constant 24 : index
    %c0_187 = arith.constant 0 : index
    %c0_188 = arith.constant 0 : index
    %337 = vector.load %arg2[%c24_186, %c0_187, %c0_188] : memref<30x1x128xf32, #tpu.memory_space<vmem>>, vector<1x1x128xf32>
    %338 = vector.shape_cast %337 : vector<1x1x128xf32> to vector<1x128xf32>
    %339 = arith.subf %338, %208 : vector<1x128xf32>
    %340 = math.exp %339 : vector<1x128xf32>
    %341 = arith.addf %332, %340 : vector<1x128xf32>
    %c14_189 = arith.constant 14 : index
    %c0_190 = arith.constant 0 : index
    %c0_191 = arith.constant 0 : index
    %342 = vector.load %arg4[%c14_189, %c0_190, %c0_191] : memref<20x1x128xf32, #tpu.memory_space<vmem>>, vector<1x1x128xf32>
    %343 = vector.shape_cast %342 : vector<1x1x128xf32> to vector<1x128xf32>
    %344 = arith.mulf %343, %338 : vector<1x128xf32>
    %345 = arith.addf %336, %344 : vector<1x128xf32>
    %c25_192 = arith.constant 25 : index
    %c0_193 = arith.constant 0 : index
    %c0_194 = arith.constant 0 : index
    %346 = vector.load %arg2[%c25_192, %c0_193, %c0_194] : memref<30x1x128xf32, #tpu.memory_space<vmem>>, vector<1x1x128xf32>
    %347 = vector.shape_cast %346 : vector<1x1x128xf32> to vector<1x128xf32>
    %348 = arith.subf %347, %208 : vector<1x128xf32>
    %349 = math.exp %348 : vector<1x128xf32>
    %350 = arith.addf %341, %349 : vector<1x128xf32>
    %c15_195 = arith.constant 15 : index
    %c0_196 = arith.constant 0 : index
    %c0_197 = arith.constant 0 : index
    %351 = vector.load %arg4[%c15_195, %c0_196, %c0_197] : memref<20x1x128xf32, #tpu.memory_space<vmem>>, vector<1x1x128xf32>
    %352 = vector.shape_cast %351 : vector<1x1x128xf32> to vector<1x128xf32>
    %353 = arith.mulf %352, %347 : vector<1x128xf32>
    %354 = arith.addf %345, %353 : vector<1x128xf32>
    %c26_198 = arith.constant 26 : index
    %c0_199 = arith.constant 0 : index
    %c0_200 = arith.constant 0 : index
    %355 = vector.load %arg2[%c26_198, %c0_199, %c0_200] : memref<30x1x128xf32, #tpu.memory_space<vmem>>, vector<1x1x128xf32>
    %356 = vector.shape_cast %355 : vector<1x1x128xf32> to vector<1x128xf32>
    %357 = arith.subf %356, %208 : vector<1x128xf32>
    %358 = math.exp %357 : vector<1x128xf32>
    %359 = arith.addf %350, %358 : vector<1x128xf32>
    %c16_201 = arith.constant 16 : index
    %c0_202 = arith.constant 0 : index
    %c0_203 = arith.constant 0 : index
    %360 = vector.load %arg4[%c16_201, %c0_202, %c0_203] : memref<20x1x128xf32, #tpu.memory_space<vmem>>, vector<1x1x128xf32>
    %361 = vector.shape_cast %360 : vector<1x1x128xf32> to vector<1x128xf32>
    %362 = arith.mulf %361, %356 : vector<1x128xf32>
    %363 = arith.addf %354, %362 : vector<1x128xf32>
    %c27_204 = arith.constant 27 : index
    %c0_205 = arith.constant 0 : index
    %c0_206 = arith.constant 0 : index
    %364 = vector.load %arg2[%c27_204, %c0_205, %c0_206] : memref<30x1x128xf32, #tpu.memory_space<vmem>>, vector<1x1x128xf32>
    %365 = vector.shape_cast %364 : vector<1x1x128xf32> to vector<1x128xf32>
    %366 = arith.subf %365, %208 : vector<1x128xf32>
    %367 = math.exp %366 : vector<1x128xf32>
    %368 = arith.addf %359, %367 : vector<1x128xf32>
    %c17_207 = arith.constant 17 : index
    %c0_208 = arith.constant 0 : index
    %c0_209 = arith.constant 0 : index
    %369 = vector.load %arg4[%c17_207, %c0_208, %c0_209] : memref<20x1x128xf32, #tpu.memory_space<vmem>>, vector<1x1x128xf32>
    %370 = vector.shape_cast %369 : vector<1x1x128xf32> to vector<1x128xf32>
    %371 = arith.mulf %370, %365 : vector<1x128xf32>
    %372 = arith.addf %363, %371 : vector<1x128xf32>
    %c28_210 = arith.constant 28 : index
    %c0_211 = arith.constant 0 : index
    %c0_212 = arith.constant 0 : index
    %373 = vector.load %arg2[%c28_210, %c0_211, %c0_212] : memref<30x1x128xf32, #tpu.memory_space<vmem>>, vector<1x1x128xf32>
    %374 = vector.shape_cast %373 : vector<1x1x128xf32> to vector<1x128xf32>
    %375 = arith.subf %374, %208 : vector<1x128xf32>
    %376 = math.exp %375 : vector<1x128xf32>
    %377 = arith.addf %368, %376 : vector<1x128xf32>
    %c18_213 = arith.constant 18 : index
    %c0_214 = arith.constant 0 : index
    %c0_215 = arith.constant 0 : index
    %378 = vector.load %arg4[%c18_213, %c0_214, %c0_215] : memref<20x1x128xf32, #tpu.memory_space<vmem>>, vector<1x1x128xf32>
    %379 = vector.shape_cast %378 : vector<1x1x128xf32> to vector<1x128xf32>
    %380 = arith.mulf %379, %374 : vector<1x128xf32>
    %381 = arith.addf %372, %380 : vector<1x128xf32>
    %c29_216 = arith.constant 29 : index
    %c0_217 = arith.constant 0 : index
    %c0_218 = arith.constant 0 : index
    %382 = vector.load %arg2[%c29_216, %c0_217, %c0_218] : memref<30x1x128xf32, #tpu.memory_space<vmem>>, vector<1x1x128xf32>
    %383 = vector.shape_cast %382 : vector<1x1x128xf32> to vector<1x128xf32>
    %384 = arith.subf %383, %208 : vector<1x128xf32>
    %385 = math.exp %384 : vector<1x128xf32>
    %386 = arith.addf %377, %385 : vector<1x128xf32>
    %c19_219 = arith.constant 19 : index
    %c0_220 = arith.constant 0 : index
    %c0_221 = arith.constant 0 : index
    %387 = vector.load %arg4[%c19_219, %c0_220, %c0_221] : memref<20x1x128xf32, #tpu.memory_space<vmem>>, vector<1x1x128xf32>
    %388 = vector.shape_cast %387 : vector<1x1x128xf32> to vector<1x128xf32>
    %389 = arith.mulf %388, %383 : vector<1x128xf32>
    %390 = arith.addf %381, %389 : vector<1x128xf32>
    %391 = math.log %386 : vector<1x128xf32>
    %392 = arith.addf %208, %391 : vector<1x128xf32>
    %393 = arith.subf %392, %390 : vector<1x128xf32>
    %394 = arith.mulf %3, %393 : vector<1x128xf32>
    %cst_222 = arith.constant dense<0.000000e+00> : vector<128xf32>
    %395 = vector.multi_reduction <add>, %146, %cst_222 [0] : vector<1x128xf32> to vector<128xf32>
    %396 = vector.shape_cast %395 : vector<128xf32> to vector<1x128xf32>
    %cst_223 = arith.constant dense<0.000000e+00> : vector<128xf32>
    %397 = vector.multi_reduction <add>, %149, %cst_223 [0] : vector<1x128xf32> to vector<128xf32>
    %398 = vector.shape_cast %397 : vector<128xf32> to vector<1x128xf32>
    %399 = arith.mulf %5, %92 : vector<1x128xf32>
    %cst_224 = arith.constant dense<0.000000e+00> : vector<128xf32>
    %400 = vector.multi_reduction <add>, %399, %cst_224 [0] : vector<1x128xf32> to vector<128xf32>
    %401 = vector.shape_cast %400 : vector<128xf32> to vector<1x128xf32>
    %cst_225 = arith.constant dense<0.000000e+00> : vector<128xf32>
    %402 = vector.multi_reduction <add>, %394, %cst_225 [0] : vector<1x128xf32> to vector<128xf32>
    %403 = vector.shape_cast %402 : vector<128xf32> to vector<1x128xf32>
    %cst_226 = arith.constant dense<0.000000e+00> : vector<128xf32>
    %404 = vector.multi_reduction <add>, %3, %cst_226 [0] : vector<1x128xf32> to vector<128xf32>
    %405 = vector.shape_cast %404 : vector<128xf32> to vector<1x128xf32>
    %cst_227 = arith.constant 0.000000e+00 : f32
    %406 = vector.broadcast %cst_227 : f32 to vector<3x128xf32>
    %407 = tpu.concatenate %396, %398, %401, %403, %405, %406 in 0 : vector<1x128xf32>, vector<1x128xf32>, vector<1x128xf32>, vector<1x128xf32>, vector<1x128xf32>, vector<3x128xf32> -> vector<8x128xf32>
    %c0_228 = arith.constant 0 : index
    %c0_229 = arith.constant 0 : index
    %408 = vector.load %arg7[%c0_228, %c0_229] : memref<8x128xf32, #tpu.memory_space<vmem>>, vector<8x128xf32>
    %409 = arith.addf %408, %407 : vector<8x128xf32>
    %c0_230 = arith.constant 0 : index
    %c0_231 = arith.constant 0 : index
    %410 = vector.load %arg7[%c0_230, %c0_231] : memref<8x128xf32, #tpu.memory_space<vmem>>, vector<8x128xf32>
    tpu.vector_store %arg7[%c0_230, %c0_231], %409 {strides = array<i32>} : memref<8x128xf32, #tpu.memory_space<vmem>>, vector<8x128xf32>,
    %c0_i32_232 = arith.constant 0 : i32
    %411 = arith.cmpi eq, %arg1, %c0_i32_232 : i32
    %412 = arith.extui %411 : i1 to i32
    %c0_i32_233 = arith.constant 0 : i32
    %413 = arith.cmpi ne, %412, %c0_i32_233 : i32
    scf.if %413 {
      %c0_234 = arith.constant 0 : index
      %c0_235 = arith.constant 0 : index
      %414 = vector.load %arg7[%c0_234, %c0_235] : memref<8x128xf32, #tpu.memory_space<vmem>>, vector<8x128xf32>
      %c0_236 = arith.constant 0 : index
      %c0_237 = arith.constant 0 : index
      %415 = vector.load %arg6[%c0_236, %c0_237] : memref<8x128xf32, #tpu.memory_space<vmem>>, vector<8x128xf32>
      tpu.vector_store %arg6[%c0_236, %c0_237], %414 {strides = array<i32>} : memref<8x128xf32, #tpu.memory_space<vmem>>, vector<8x128xf32>,
    } else {
    }
    return
  }
  func.func @transform_0(%arg0: i32, %arg1: i32) -> (i32, i32, i32) {
    %c1_i32 = arith.constant 1 : i32
    %0 = arith.muli %arg0, %c1_i32 : i32
    %1 = arith.addi %0, %arg1 : i32
    %c0_i32 = arith.constant 0 : i32
    %c0_i32_0 = arith.constant 0 : i32
    %c0_i32_1 = arith.constant 0 : i32
    return %c0_i32, %1, %c0_i32_0 : i32, i32, i32
  }
  func.func @transform_1(%arg0: i32, %arg1: i32) -> (i32, i32, i32) {
    %c1_i32 = arith.constant 1 : i32
    %0 = arith.muli %arg0, %c1_i32 : i32
    %1 = arith.addi %0, %arg1 : i32
    %c0_i32 = arith.constant 0 : i32
    %c0_i32_0 = arith.constant 0 : i32
    %c0_i32_1 = arith.constant 0 : i32
    return %c0_i32, %1, %c0_i32_0 : i32, i32, i32
  }
  func.func @transform_2(%arg0: i32, %arg1: i32) -> (i32, i32, i32) {
    %c1_i32 = arith.constant 1 : i32
    %0 = arith.muli %arg0, %c1_i32 : i32
    %1 = arith.addi %0, %arg1 : i32
    %c0_i32 = arith.constant 0 : i32
    %c0_i32_0 = arith.constant 0 : i32
    %c0_i32_1 = arith.constant 0 : i32
    return %c0_i32, %1, %c0_i32_0 : i32, i32, i32
  }
  func.func @transform_3(%arg0: i32, %arg1: i32) -> (i32, i32) {
    %c1_i32 = arith.constant 1 : i32
    %0 = arith.muli %arg0, %c1_i32 : i32
    %1 = arith.addi %0, %arg1 : i32
    %c0_i32 = arith.constant 0 : i32
    %c0_i32_0 = arith.constant 0 : i32
    return %1, %c0_i32 : i32, i32
  }
  func.func @transform_4(%arg0: i32, %arg1: i32) -> (i32, i32) {
    %c0_i32 = arith.constant 0 : i32
    %c0_i32_0 = arith.constant 0 : i32
    return %arg0, %c0_i32 : i32, i32
  }
}

</mosaic_0001>

<bundles_post_ra>
// kernel: tpu_custom_call.1
= control target key start
LH: loop header
LB: loop body
LE: loop exit
PB: predicated region body
PF: predicated region fallthrough
CT: control target
= control target key end

     0   :  { %9 = vsyncpa [#allocation4], 0  ;;  %s997_s0 = inlined_call_operand.hbm [shape: f32[30,1,128], index: 0, kind: input, shape index: {}]   ;;  %s998_s1 = inlined_call_operand.hbm [shape: f32[4,1,128], index: 1, kind: input, shape index: {}]   ;;  %s999_s2 = inlined_call_operand.hbm [shape: f32[20,1,128], index: 2, kind: input, shape index: {}]   ;;  %s1000_s3 = inlined_call_operand.vmem [shape: f32[1,128], index: 3, kind: input, shape index: {}]   ;;  %s1001_s4 = inlined_call_operand.hbm [shape: f32[8,128], index: 4, kind: output, shape index: {}]  }
   0x1   :  { %10 = vsyncpa [#allocation7], 0 }
   0x2   :  { %11 = vsyncpa [#allocation5], 0  ;;  %s33_s17 = sshll.u32 %s998_s1, 4  ;;  %s669_s18 = smov [#allocation6]   ;;  %s34_s17 = int_to_ptr.hbm [resolvable:$true] %s33_s17 }
   0x3   :  { %s35_s19 = sshll.u32 %s669_s18, 4  ;;  %s18_s22 = sshll.u32 %s997_s0, 4  ;;  %s36_s19 = int_to_ptr.vmem [resolvable:$true] %s35_s19  ;;  %s19_s22 = int_to_ptr.hbm [resolvable:$true] %s18_s22 }
   0x4   :  { %s670_s23 = smov 16   ;;  %s671_s24 = smov 1  }
   0x5   :  { %41 = dma.hbm_to_vmem [thread:$0]  %s34_s17, 64, %s36_s19, [#allocation7], %s670_s23, %s670_s23, %s671_s24  }
   0x6   :  { %s672_s25 = smov [#allocation3]   ;;  %s48_s29 = sshll.u32 %s999_s2, 4  ;;  %s49_s29 = int_to_ptr.hbm [resolvable:$true] %s48_s29 }
   0x7   :  { %s20_s26 = sshll.u32 %s672_s25, 4  ;;  %s673_s1 = smov [#allocation8]   ;;  %s21_s26 = int_to_ptr.vmem [resolvable:$true] %s20_s26 }
   0x8   :  { %26 = dma.hbm_to_vmem [thread:$0]  %s19_s22, 480, %s21_s26, [#allocation4], %s670_s23, %s670_s23, %s671_s24  }
   0x9   :  { %s50_s30 = sshll.u32 %s673_s1, 4  ;;  %s51_s30 = int_to_ptr.vmem [resolvable:$true] %s50_s30 }
   0xa   :  { %56 = dma.hbm_to_vmem [thread:$0]  %s49_s29, 320, %s51_s30, [#allocation7], %s670_s23, %s670_s23, %s671_s24  }
   0xb   :  { %663 = dma.done.wait [#allocation4], 480  }
   0xc   :  { %664 = vsyncadd [#allocation4], 4294966816 }
   0xd   :  { %665 = dma.done.wait [#allocation7], 384  }
   0xe   :  { %666 = vsyncadd [#allocation7], 4294966912  ;;  %v95_v0 = vld [vmem:[#allocation6] sm:$0x1]  ;;  %v97_v1 = vld [vmem:[#allocation6 + $0x1] sm:$0x1] }
   0xf   :  { %v99_v2 = vld [vmem:[#allocation6 + $0x2] sm:$0x1]  ;;  %v101_v3 = vld [vmem:[#allocation6 + $0x3] sm:$0x1]  ;;  %v117_v5 = vld [vmem:[#allocation3 + $0x2] sm:$0x1] }
  0x10   :  { %v113_v4 = vld [vmem:[#allocation3] sm:$0x1]  ;;  %v102_v6 = vmul.f32 0.25, %v95_v0  ;;  %v103_v7 = vmul.f32 0.25, %v97_v1  ;;  %v115_v8 = vld [vmem:[#allocation3 + $0x1] sm:$0x1] }
  0x11   :  { %v119_v9 = vld [vmem:[#allocation3 + $0x3] sm:$0x1]  ;;  %v104_v10 = vmul.f32 0.5, %v99_v2  ;;  %v106_v11 = vmul.f32 0.5, %v101_v3  ;;  %v709_v12 = vld [vmem:[#allocation3 + $0xa] sm:$0x1] }
  0x12   :  { %v711_v13 = vld [vmem:[#allocation3 + $0xb] sm:$0x1]  ;;  %v124_v14 = vmul.f32 0.25, %v113_v4  ;;  %v126_v15 = vmul.f32 0.5, %v117_v5  ;;  %v125_v16 = vmul.f32 0.25, %v115_v8  ;;  %v128_v17 = vmul.f32 0.5, %v119_v9 }
  0x13   :  { %v163_v18 = vld [vmem:[#allocation3 + $0x5] sm:$0x1]  ;;  %v165_v19 = vld [vmem:[#allocation3 + $0x6] sm:$0x1]  ;;  %v167_v20 = vld [vmem:[#allocation3 + $0x7] sm:$0x1]  ;;  %v238_v22 = vmax.f32 %v709_v12, %v711_v13  ;;  %v715_v23 = vsub.f32 %v102_v6, %v104_v10  ;;  %v717_v24 = vsub.f32 %v103_v7, %v106_v11  ;;  %v719_v25 = vadd.f32 %v104_v10, %v102_v6 }
  0x14   :  { %v169_v21 = vld [vmem:[#allocation3 + $0x8] sm:$0x1]  ;;  %v174_v26 = vmul.f32 0.25, %v163_v18  ;;  %v721_v27 = vld [vmem:[#allocation3 + $0xc] sm:$0x1]  ;;  %v723_v28 = vadd.f32 %v106_v11, %v103_v7  ;;  %v725_v29 = vsub.f32 %v124_v14, %v126_v15  ;;  %v727_v30 = vadd.f32 %v126_v15, %v124_v14  ;;  %s674_s7 = smov [#allocation9]  }
  0x15   :  { %v175_v31 = vmul.f32 0.25, %v165_v19  ;;  %v729_v32 = vsub.f32 %v125_v16, %v128_v17  ;;  %v731_v33 = vadd.f32 %v128_v17, %v125_v16  ;;  %v176_v34 = vmul.f32 0.5, %v167_v20  ;;  %v733_v36 = vld [vmem:[#allocation3 + $0xd] sm:$0x1]  ;;  %v742_v41 = vld [vmem:[#allocation3 + $0xe] sm:$0x1] }
  0x16   :  { %v178_v35 = vmul.f32 0.5, %v169_v21  ;;  %v241_v37 = vmax.f32 %v238_v22, %v721_v27  ;;  %v132_v42 = vmin.f32 %v727_v30, %v719_v25  ;;  %v133_v45 = vmax.f32 %v725_v29, %v715_v23  ;;  %v757_v49 = vld [vmem:[#allocation3 + $0xf] sm:$0x1]  ;;  %v766_v54 = vld [vmem:[#allocation3 + $0x10] sm:$0x1]  ;;  %s498_s8 = sshll.u32 %s674_s7, 4  ;;  %s499_s8 = int_to_ptr.vmem [resolvable:$true] %s498_s8 }
  0x17   :  { %v736_v38 = vsub.f32 %v174_v26, %v176_v34  ;;  %v740_v40 = vadd.f32 %v176_v34, %v174_v26  ;;  %v136_v46 = vmin.f32 %v731_v33, %v723_v28  ;;  %v137_v47 = vmax.f32 %v729_v32, %v717_v24  ;;  %v782_v3 = vld [vmem:[#allocation3 + $0x11] sm:$0x1]  ;;  %v784_v5 = vld [vmem:[#allocation3 + $0x12] sm:$0x1]  ;;  %v787_v15 = vld [vmem:[#allocation3 + $0x13] sm:$0x1] }
  0x18   :  { %v738_v39 = vsub.f32 %v175_v31, %v178_v35  ;;  %v746_v43 = vadd.f32 %v178_v35, %v175_v31  ;;  %v244_v44 = vmax.f32 %v241_v37, %v733_v36  ;;  %v110_v55 = vsub.f32 %v719_v25, %v715_v23  ;;  %v793_v20 = vld [vmem:[#allocation3 + $0x14] sm:$0x1]  ;;  %v297_v26 = vld [vmem:[#allocation8] sm:$0x1]  ;;  %v797_v31 = vld [vmem:[#allocation3 + $0x15] sm:$0x1] }
  0x19   :  { %v182_v48 = vmin.f32 %v740_v40, %v719_v25  ;;  %v183_v50 = vmax.f32 %v736_v38, %v715_v23  ;;  %v111_v56 = vsub.f32 %v723_v28, %v717_v24  ;;  %v141_v57 = vsub.f32 %v727_v30, %v725_v29  ;;  %v801_v37 = vld [vmem:[#allocation3 + $0x16] sm:$0x1]  ;;  %s500_s11 = sshll.u32 %s1001_s4, 4  ;;  %s501_s11 = int_to_ptr.hbm [resolvable:$true] %s500_s11 }
  0x1a   :  { %v186_v51 = vmin.f32 %v746_v43, %v723_v28  ;;  %v187_v52 = vmax.f32 %v738_v39, %v717_v24  ;;  %v247_v53 = vmax.f32 %v244_v44, %v742_v41  ;;  %v134_v59 = vsub.f32 %v132_v42, %v133_v45  ;;  %v305_v44 = vld [vmem:[#allocation8 + $0x1] sm:$0x1] }
  0x1b   :  { %v138_v60 = vsub.f32 %v136_v46, %v137_v47  ;;  %v142_v61 = vsub.f32 %v731_v33, %v729_v32  ;;  %v191_v62 = vsub.f32 %v740_v40, %v736_v38  ;;  %v184_v63 = vsub.f32 %v182_v48, %v183_v50  ;;  %v807_v48 = vld [vmem:[#allocation3 + $0x17] sm:$0x1]  ;;  %v313_v50 = vld [vmem:[#allocation8 + $0x2] sm:$0x1] }
  0x1c   :  { %v250_v58 = vmax.f32 %v247_v53, %v757_v49  ;;  %v188_v0 = vsub.f32 %v186_v51, %v187_v52  ;;  %v192_v1 = vsub.f32 %v746_v43, %v738_v39  ;;  %v112_v4 = vmul.f32 %v111_v56, %v110_v55  ;;  %v812_v53 = vld [vmem:[#allocation3 + $0x18] sm:$0x1] }
  0x1d   :  { %v135_v6 = vmax.f32 %v134_v59, 0.0  ;;  %v139_v7 = vmax.f32 %v138_v60, 0.0  ;;  %v143_v8 = vmul.f32 %v142_v61, %v141_v57  ;;  %v185_v10 = vmax.f32 %v184_v63, 0.0  ;;  %v321_v59 = vld [vmem:[#allocation8 + $0x3] sm:$0x1] }
  0x1e   :  { %v253_v2 = vmax.f32 %v250_v58, %v766_v54  ;;  %v189_v11 = vmax.f32 %v188_v0, 0.0  ;;  %v193_v14 = vmul.f32 %v192_v1, %v191_v62  ;;  %v298_v42 = vmul.f32 %v297_v26, %v709_v12  ;;  %v818_v60 = vld [vmem:[#allocation3 + $0x19] sm:$0x1]  ;;  %v822_v62 = vld [vmem:[#allocation3 + $0x1a] sm:$0x1] }
  0x1f   :  { %v790_v17 = vmul.f32 %v139_v7, %v135_v6  ;;  %v144_v18 = vadd.f32 %v143_v8, %v112_v4  ;;  %v306_v47 = vmul.f32 %v305_v44, %v711_v13  ;;  %v314_v56 = vmul.f32 %v313_v50, %v721_v27  ;;  %v830_v7 = vld [vmem:[#allocation3 + $0x1c] sm:$0x1]  ;;  %v353_v50 = vld [vmem:[#allocation8 + $0x7] sm:$0x1] }
  0x20   :  { %v256_v9 = vmax.f32 %v253_v2, %v782_v3  ;;  %v795_v21 = vmul.f32 %v189_v11, %v185_v10  ;;  %v194_v22 = vadd.f32 %v193_v14, %v112_v4  ;;  %v322_v0 = vmul.f32 %v321_v59, %v733_v36  ;;  %v329_v2 = vld [vmem:[#allocation8 + $0x4] sm:$0x1]  ;;  %v827_v4 = vld [vmem:[#allocation3 + $0x1b] sm:$0x1]  ;;  %v337_v11 = vld [vmem:[#allocation8 + $0x5] sm:$0x1] }
  0x21   :  { %v145_v35 = vsub.f32 %v144_v18, %v790_v17  ;;  %v307_v55 = vadd.f32 %v306_v47, %v298_v42  ;;  %v338_v26 = vmul.f32 %v337_v11, %v757_v49  ;;  %vm475_vm9 = vcmask 1040384  }
  0x22   :  { %v259_v16 = vmax.f32 %v256_v9, %v784_v5  ;;  %v195_v45 = vsub.f32 %v194_v22, %v795_v21  ;;  %v330_v9 = vmul.f32 %v329_v2, %v742_v41  ;;  %vm477_vm10 = vcmask 1041408  }
  0x23   :  { %v810_v52 = vadd.f32 1e-09, %v145_v35  ;;  %v315_v63 = vadd.f32 %v314_v56, %v307_v55  ;;  %v345_v35 = vld [vmem:[#allocation8 + $0x6] sm:$0x1]  ;;  %vm479_vm11 = vcmask 1042432   ;;  %vm481_vm12 = vcmask 1043456  }
  0x24   :  { %v262_v19 = vmax.f32 %v259_v16, %v787_v15  ;;  %v815_v57 = vadd.f32 1e-09, %v195_v45  ;;  %v836_v16 = vld [vmem:[#allocation3 + $0x1d] sm:$0x1]  ;;  %v346_v47 = vmul.f32 %v345_v35, %v766_v54  ;;  %vm483_vm13 = vcmask 1044480  }
  0x25   :  { %521 = vrcp.f32 %v810_v52  ;;  %v323_v8 = vadd.f32 %v322_v0, %v315_v63  ;;  %vm152_vm0 = vweird.f32 %v810_v52  ;;  %v158_v11 = vand.u32 2147483648, %v810_v52 }
  0x26   :  { %v265_v34 = vmax.f32 %v262_v19, %v793_v20  ;;  %523 = vrcp.f32 %v815_v57  ;;  %vm202_vm2 = vweird.f32 %v815_v57 }
  0x27   :  { %v331_v22 = vadd.f32 %v330_v9, %v323_v8  ;;  %v361_v8 = vld [vmem:[#allocation8 + $0x8] sm:$0x1] }
  0x28   :  { %v268_v46 = vmax.f32 %v265_v34, %v797_v31 }
  0x2a   :  { %v271_v51 = vmax.f32 %v268_v46, %v801_v37  ;;  %v339_v46 = vadd.f32 %v338_v26, %v331_v22 }
  0x2b   :  { %v834_v14 = vpop.eup %521 }
  0x2c   :  { %v274_v58 = vmax.f32 %v271_v51, %v807_v48  ;;  %v838_v18 = vpop.eup %523  ;;  %v148_v42 = vmul.f32 %v834_v14, %v810_v52  ;;  %v347_v2 = vadd.f32 %v346_v47, %v339_v46  ;;  %vm153_vm1 = vweird.f32 %v834_v14 }
  0x2d   :  { %v198_v44 = vmul.f32 %v838_v18, %v815_v57  ;;  %vm203_vm3 = vweird.f32 %v838_v18  ;;  %vm887_vm4 = vmor %vm152_vm0, %vm153_vm1 }
  0x2e   :  { %v277_v61 = vmax.f32 %v274_v58, %v812_v53  ;;  %v149_v56 = vsub.f32 1.0, %v148_v42  ;;  %v369_v42 = vld [vmem:[#allocation8 + $0x9] sm:$0x1]  ;;  %vm897_vm5 = vmor %vm202_vm2, %vm203_vm3 }
  0x2f   :  { %v199_v58 = vsub.f32 1.0, %v198_v44 }
  0x30   :  { %v280_v1 = vmax.f32 %v277_v61, %v818_v60 }
  0x32   :  { %v283_v6 = vmax.f32 %v280_v1, %v822_v62 }
  0x34   :  { %v286_v10 = vmax.f32 %v283_v6, %v827_v4 }
  0x36   :  { %v289_v19 = vmax.f32 %v286_v10, %v830_v7  ;;  %v150_v10 = vmul.f32 %v834_v14, %v149_v56 }
  0x38   :  { %v843_v34 = vmax.f32 %v289_v19, %v836_v16  ;;  %v200_v19 = vmul.f32 %v838_v18, %v199_v58  ;;  %v151_v47 = vadd.f32 %v834_v14, %v150_v10 }
  0x3a   :  { %v293_v45 = vsub.f32 %v709_v12, %v843_v34  ;;  %v300_v51 = vsub.f32 %v711_v13, %v843_v34  ;;  %v308_v55 = vsub.f32 %v721_v27, %v843_v34  ;;  %v316_v0 = vsub.f32 %v733_v36, %v843_v34 }
  0x3b   :  { %v354_v12 = vmul.f32 %v353_v50, %v782_v3  ;;  %v324_v1 = vsub.f32 %v742_v41, %v843_v34  ;;  %v332_v13 = vsub.f32 %v757_v49, %v843_v34  ;;  %v340_v6 = vsub.f32 %v766_v54, %v843_v34 }
  0x3c   :  { %v294_v59 = vmul.f32 1.442695, %v293_v45  ;;  %v301_v61 = vmul.f32 1.442695, %v300_v51  ;;  %v309_v63 = vmul.f32 1.442695, %v308_v55  ;;  %v348_v49 = vsub.f32 %v782_v3, %v843_v34 }
  0x3d   :  { %v317_v27 = vmul.f32 1.442695, %v316_v0  ;;  %v156_v36 = vand.u32 2147483647, %v810_v52  ;;  %v325_v9 = vmul.f32 1.442695, %v324_v1  ;;  %v355_v22 = vadd.f32 %v354_v12, %v347_v2 }
  0x3e   :  { %525 = vpow2.f32 %v294_v59  ;;  %v333_v41 = vmul.f32 1.442695, %v332_v13  ;;  %v362_v54 = vmul.f32 %v361_v8, %v784_v5  ;;  %v341_v26 = vmul.f32 1.442695, %v340_v6  ;;  %v401_v1 = vld [vmem:[#allocation8 + $0xd] sm:$0x1] }
  0x3f   :  { %527 = vpow2.f32 %v301_v61  ;;  %v356_v35 = vsub.f32 %v784_v5, %v843_v34  ;;  %v206_v3 = vand.u32 2147483647, %v815_v57  ;;  %v208_v45 = vand.u32 2147483648, %v815_v57  ;;  %v377_v57 = vld [vmem:[#allocation8 + $0xa] sm:$0x1] }
  0x40   :  { %529 = vpow2.f32 %v309_v63  ;;  %v349_v50 = vmul.f32 1.442695, %v348_v49  ;;  %v364_v51 = vsub.f32 %v787_v15, %v843_v34  ;;  %v201_v56 = vadd.f32 %v838_v18, %v200_v19 }
  0x41   :  { %531 = vpow2.f32 %v317_v27  ;;  %v363_v59 = vadd.f32 %v362_v54, %v355_v22  ;;  %v370_v61 = vmul.f32 %v369_v42, %v787_v15  ;;  %v357_v52 = vmul.f32 1.442695, %v356_v35  ;;  %v385_v54 = vld [vmem:[#allocation8 + $0xb] sm:$0x1] }
  0x42   :  { %533 = vpow2.f32 %v325_v9  ;;  %v372_v12 = vsub.f32 %v793_v20, %v843_v34  ;;  %vm903_vm6 = vcmp.eq.f32.partialorder %v156_v36, 8.507059e+37  ;;  %v159_v13 = vor.u32 1.1754944e-38, %v158_v11 }
  0x43   :  { %535 = vpow2.f32 %v333_v41  ;;  %vm907_vm7 = vcmp.eq.f32.partialorder %v206_v3, 8.507059e+37  ;;  %v209_v6 = vor.u32 1.1754944e-38, %v208_v45  ;;  %v365_v8 = vmul.f32 1.442695, %v364_v51  ;;  %v393_v51 = vld [vmem:[#allocation8 + $0xc] sm:$0x1] }
  0x44   :  { %v526_v44 = vpop.eup %525  ;;  %537 = vpow2.f32 %v341_v26  ;;  %v380_v9 = vsub.f32 %v797_v31, %v843_v34  ;;  %v155_v36 = vsel %vm887_vm4, %v834_v14, %v151_v47  ;;  %v205_v10 = vsel %vm897_vm5, %v838_v18, %v201_v56 }
  0x45   :  { %v528_v46 = vpop.eup %527  ;;  %539 = vpow2.f32 %v349_v50  ;;  %v371_v49 = vadd.f32 %v370_v61, %v363_v59  ;;  %v373_v19 = vmul.f32 1.442695, %v372_v12  ;;  %v378_v22 = vmul.f32 %v377_v57, %v793_v20 }
  0x46   :  { %v530_v55 = vpop.eup %529  ;;  %v303_v58 = vadd.f32 %v528_v46, %v526_v44  ;;  %541 = vpow2.f32 %v357_v52  ;;  %v388_v26 = vsub.f32 %v801_v37, %v843_v34  ;;  %v381_v44 = vmul.f32 1.442695, %v380_v9 }
  0x47   :  { %v532_v63 = vpop.eup %531  ;;  %543 = vpow2.f32 %v365_v8  ;;  %v396_v14 = vsub.f32 %v807_v48, %v843_v34  ;;  %v160_v18 = vsel %vm903_vm6, %v159_v13, %v155_v36  ;;  %v210_v3 = vsel %vm907_vm7, %v209_v6, %v205_v10 }
  0x48   :  { %v311_v2 = vadd.f32 %v530_v55, %v303_v58  ;;  %v534_v27 = vpop.eup %533  ;;  %v386_v20 = vmul.f32 %v385_v54, %v797_v31  ;;  %545 = vpow2.f32 %v373_v19  ;;  %v379_v47 = vadd.f32 %v378_v22, %v371_v49  ;;  %v409_v49 = vld [vmem:[#allocation8 + $0xe] sm:$0x1] }
  0x49   :  { %v536_v11 = vpop.eup %535  ;;  %v389_v50 = vmul.f32 1.442695, %v388_v26  ;;  %v404_v55 = vsub.f32 %v812_v53, %v843_v34  ;;  %547 = vpow2.f32 %v381_v44  ;;  %v397_v58 = vmul.f32 1.442695, %v396_v14 }
  0x4a   :  { %v319_v41 = vadd.f32 %v532_v63, %v311_v2  ;;  %v538_v42 = vpop.eup %537  ;;  %v412_v59 = vsub.f32 %v818_v60, %v843_v34  ;;  %v934_v61 = vmul.f32 %v160_v18, %v790_v17  ;;  %v937_v31 = vmul.f32 %v210_v3, %v795_v21  ;;  %v417_v3 = vld [vmem:[#allocation8 + $0xf] sm:$0x1] }
  0x4b   :  { %v540_v46 = vpop.eup %539  ;;  %v394_v0 = vmul.f32 %v393_v51, %v801_v37  ;;  %v387_v12 = vadd.f32 %v386_v20, %v379_v47  ;;  %549 = vpow2.f32 %v389_v50  ;;  %v405_v13 = vmul.f32 1.442695, %v404_v55  ;;  %v121_v47 = vld [vmem:[#allocation3 + $0x4] sm:$0x1]  ;;  %v171_v50 = vld [vmem:[#allocation3 + $0x9] sm:$0x1] }
  0x4c   :  { %v327_v35 = vadd.f32 %v534_v27, %v319_v41  ;;  %v542_v56 = vpop.eup %541  ;;  %v420_v15 = vsub.f32 %v822_v62, %v843_v34  ;;  %551 = vpow2.f32 %v397_v58  ;;  %v413_v27 = vmul.f32 1.442695, %v412_v59 }
  0x4d   :  { %v544_v52 = vpop.eup %543  ;;  %v428_v17 = vsub.f32 %v827_v4, %v843_v34  ;;  %vm946_vm8 = vcmp.gt.f32.partialorder %v937_v31, %v934_v61  ;;  %v402_v6 = vmul.f32 %v401_v1, %v807_v48  ;;  %v395_v9 = vadd.f32 %v394_v0, %v387_v12 }
  0x4e   :  { %v335_v45 = vadd.f32 %v536_v11, %v327_v35  ;;  %v546_v57 = vpop.eup %545  ;;  %553 = vpow2.f32 %v405_v13  ;;  %v421_v36 = vmul.f32 1.442695, %v420_v15  ;;  %v436_v10 = vsub.f32 %v830_v7, %v843_v34 }
  0x4f   :  { %v548_v8 = vpop.eup %547  ;;  %555 = vpow2.f32 %v413_v27  ;;  %v429_v19 = vmul.f32 1.442695, %v428_v17  ;;  %v444_v22 = vsub.f32 %v836_v16, %v843_v34  ;;  %v213_v48 = vsel %vm946_vm8, %v736_v38, %v725_v29  ;;  %v441_v17 = vld [vmem:[#allocation8 + $0x12] sm:$0x1] }
  0x50   :  { %v343_v5 = vadd.f32 %v538_v42, %v335_v45  ;;  %v403_v35 = vadd.f32 %v402_v6, %v395_v9  ;;  %v410_v42 = vmul.f32 %v409_v49, %v812_v53  ;;  %557 = vpow2.f32 %v421_v36 }
  0x51   :  { %v550_v11 = vpop.eup %549  ;;  %v437_v44 = vmul.f32 1.442695, %v436_v10  ;;  %v214_v14 = vsel %vm946_vm8, %v738_v39, %v729_v32  ;;  %559 = vpow2.f32 %v429_v19  ;;  %v445_v20 = vmul.f32 1.442695, %v444_v22 }
  0x52   :  { %v351_v63 = vadd.f32 %v540_v46, %v343_v5  ;;  %v552_v26 = vpop.eup %551  ;;  %v215_v29 = vsel %vm946_vm8, %v740_v40, %v727_v30  ;;  %v219_v38 = vsub.f32 %v213_v48, %v715_v23  ;;  %v220_v51 = vsub.f32 %v214_v14, %v717_v24  ;;  %v425_v5 = vld [vmem:[#allocation8 + $0x10] sm:$0x1] }
  0x53   :  { %v411_v55 = vadd.f32 %v410_v42, %v403_v35  ;;  %v418_v32 = vmul.f32 %v417_v3, %v818_v60  ;;  %561 = vpow2.f32 %v437_v44  ;;  %v216_v30 = vsel %vm946_vm8, %v746_v43, %v731_v33  ;;  %v433_v33 = vld [vmem:[#allocation8 + $0x11] sm:$0x1] }
  0x54   :  { %v359_v2 = vadd.f32 %v542_v56, %v351_v63  ;;  %v554_v45 = vpop.eup %553  ;;  %563 = vpow2.f32 %v445_v20  ;;  %v217_v23 = vsel %vm946_vm8, %v171_v50, %v121_v47  ;;  %v218_v24 = vsel %vm946_vm8, %v937_v31, %v934_v61 }
  0x55   :  { %v556_v46 = vpop.eup %555  ;;  %v221_v40 = vsub.f32 %v215_v29, %v719_v25  ;;  %v223_v59 = vmul.f32 %v219_v38, %v219_v38  ;;  %v224_v63 = vmul.f32 %v220_v51, %v220_v51  ;;  %v419_v0 = vadd.f32 %v418_v32, %v411_v55  ;;  %v520_v29 = vld [vmem:[%s1000_s3] ss:$0 sm:$0xff] }
  0x56   :  { %v367_v37 = vadd.f32 %v544_v52, %v359_v2  ;;  %v558_v56 = vpop.eup %557  ;;  %v426_v52 = vmul.f32 %v425_v5, %v822_v62  ;;  %v222_v1 = vsub.f32 %v216_v30, %v723_v28  ;;  %v231_v13 = vsub.f32 %v217_v23, %v218_v24  ;;  %v93_v62 = vld [vmem:[%s1000_s3] sm:$0x1] }
  0x57   :  { %v560_v58 = vpop.eup %559  ;;  %v226_v27 = vmul.f32 %v221_v40, %v221_v40  ;;  %v434_v25 = vmul.f32 %v433_v33, %v827_v4  ;;  %v122_v21 = vmul.f32 %v121_v47, %v121_v47  ;;  %v442_v10 = vmul.f32 %v441_v17, %v830_v7 }
  0x58   :  { %v375_v41 = vadd.f32 %v546_v57, %v367_v37  ;;  %v225_v57 = vadd.f32 %v224_v63, %v223_v59  ;;  %v427_v61 = vadd.f32 %v426_v52, %v419_v0  ;;  %v172_v37 = vmul.f32 %v171_v50, %v171_v50 }
  0x59   :  { %v562_v43 = vpop.eup %561  ;;  %v228_v6 = vmul.f32 %v222_v1, %v222_v1  ;;  %v232_v28 = vmul.f32 %v231_v13, %v231_v13  ;;  %v94_v49 = vsub.f32 1.0, %v93_v62 }
  0x5a   :  { %v383_v54 = vadd.f32 %v548_v8, %v375_v41  ;;  %v564_v2 = vpop.eup %563  ;;  %v227_v9 = vadd.f32 %v226_v27, %v225_v57  ;;  %v435_v36 = vadd.f32 %v434_v25, %v427_v61  ;;  %v449_v41 = vld [vmem:[#allocation8 + $0x13] sm:$0x1] }
  0x5b   :  { %v233_v19 = vmul.f32 %v232_v28, %v93_v62  ;;  %v450_v48 = vmul.f32 %v449_v41, %v836_v16 }
  0x5c   :  { %v391_v18 = vadd.f32 %v550_v11, %v383_v54  ;;  %v173_v11 = vadd.f32 %v172_v37, %v122_v21  ;;  %v229_v4 = vadd.f32 %v228_v6, %v227_v9  ;;  %v443_v22 = vadd.f32 %v442_v10, %v435_v36 }
  0x5d   :  { %v464_v14 = vperm.slane %v233_v19, 0 }
  0x5e   :  { %v399_v53 = vadd.f32 %v552_v26, %v391_v18  ;;  %v459_v26 = vmul.f32 %v173_v11, %v94_v49  ;;  %v230_v35 = vmul.f32 %v229_v4, %v93_v62  ;;  %v451_v42 = vadd.f32 %v450_v48, %v443_v22 }
  0x60   :  { %v407_v39 = vadd.f32 %v554_v45, %v399_v53  ;;  %v467_v3 = vperm.slane %v459_v26, 0  ;;  %v476_v45 = vsel %vm475_vm9, %v230_v35, %v464_v14 }
  0x62   :  { %v415_v60 = vadd.f32 %v556_v46, %v407_v39  ;;  %v478_v38 = vsel %vm477_vm10, %v476_v45, %v467_v3 }
  0x64   :  { %v423_v12 = vadd.f32 %v558_v56, %v415_v60 }
  0x66   :  { %v431_v15 = vadd.f32 %v560_v58, %v423_v12 }
  0x68   :  { %v439_v31 = vadd.f32 %v562_v43, %v431_v15 }
  0x6a   :  { %v447_v8 = vadd.f32 %v564_v2, %v439_v31 }
  0x6c   :  { %565 = vlog2.f32 %v447_v8 }
  0x72   :  { %v566_v54 = vpop.eup %565 }
  0x73   :  { %v453_v44 = vmul.f32 0.6931472, %v566_v54 }
  0x75   :  { %v454_v18 = vadd.f32 %v453_v44, %v843_v34 }
  0x77   :  { %v455_v7 = vsub.f32 %v454_v18, %v451_v42 }
  0x79   :  { %v456_v20 = vmul.f32 %v455_v7, %v93_v62 }
  0x7b   :  { %v470_v16 = vperm.slane %v456_v20, 0 }
  0x7d   :  { %v480_v34 = vsel %vm479_vm11, %v478_v38, %v470_v16 }
  0x7e   :  { %v482_v53 = vsel %vm481_vm12, %v480_v34, %v520_v29 }
  0x7f   :  { %v484_v46 = vsel %vm483_vm13, %v482_v53, 0.0 }
  0x80   :  { %492 = vst [vmem:[#allocation9] sm:$0xff] %v484_v46 }
  0x81   :  { %503 = dma.vmem_to_hbm [thread:$0]  %s499_s8, 128, %s501_s11, [#allocation5]  }
  0x82   :  { %667 = dma.done.wait [#allocation5], 128  }
  0x83   :  { %668 = vsyncadd [#allocation5], 4294967168 }
  0x84   :  { %508 = vsyncpa [#allocation4], 1 }
  0x85   :  { %509 = vsyncpa [#allocation7], 1 }
  0x86   :  { %510 = vsyncpa [#allocation5], 1 }

</bundles_post_ra>
